<compile_context>
chip_gen: v5e
topology: v5e:2x2
jax: 0.10.0
libtpu: 0.0.40
codegen_flags: <defaults>
</compile_context>

<pallas_src>
import functools

import jax
import jax.numpy as jnp
from jax import lax
from jax.experimental import pallas as pl
from jax.experimental.pallas import tpu as pltpu


# ----------------------------- Pallas kernel -------------------------------

def _round_up(a, b):
    return (a + b - 1) // b * b


def _matmul_kernel(x_ref, w_ref, b_ref, o_ref, acc_ref, *, act):
    """One (tm, tn) output tile; K is the last ("arbitrary") grid axis."""
    @pl.when(pl.program_id(2) == 0)
    def _init():
        acc_ref[...] = jnp.zeros_like(acc_ref)

    acc_ref[...] += jnp.dot(x_ref[...], w_ref[...],
                            preferred_element_type=jnp.float32)

    @pl.when(pl.program_id(2) == pl.num_programs(2) - 1)
    def _finalize():
        y = acc_ref[...] + b_ref[...]          # bias (BatchNorm already folded in)
        if act == "leaky":
            y = jnp.where(y > 0, y, 0.2 * y)   # LeakyReLU(0.2), f32 epilogue
        elif act == "sigmoid":
            y = jax.nn.sigmoid(y)
        o_ref[...] = y.astype(o_ref.dtype)


def matmul_fused_pallas(x, w, b, act="none", out_dtype=jnp.float32):
    """out = act(x @ w + b): bf16 MXU inputs, f32 accumulate/epilogue, tiled grid."""
    M, K = x.shape
    Kw, N = w.shape
    assert K == Kw
    x = x.astype(jnp.bfloat16)
    w = w.astype(jnp.bfloat16)
    b = jnp.asarray(b, jnp.float32).reshape(1, N)

    # Tile sizes: K/N tiles are multiples of 128 (or the full dim); M is padded
    # to its tile.  Kept small enough to double-buffer inside 32 MiB scoped VMEM.
    tk = K if K <= 512 else 512
    tn = N if N <= 256 else 256
    assert K % tk == 0 and N % tn == 0, (K, N)
    tm = 256 if M >= 256 else _round_up(M, 8)
    Mp = _round_up(M, tm)
    if Mp != M:
        x = jnp.pad(x, ((0, Mp - M), (0, 0)))

    grid = (Mp // tm, N // tn, K // tk)
    out = pl.pallas_call(
        functools.partial(_matmul_kernel, act=act),
        out_shape=jax.ShapeDtypeStruct((Mp, N), out_dtype),
        grid=grid,
        in_specs=[
            pl.BlockSpec((tm, tk), lambda i, j, k: (i, k)),
            pl.BlockSpec((tk, tn), lambda i, j, k: (k, j)),
            pl.BlockSpec((1, tn), lambda i, j, k: (0, j)),
        ],
        out_specs=pl.BlockSpec((tm, tn), lambda i, j, k: (i, j)),
        scratch_shapes=[pltpu.VMEM((tm, tn), jnp.float32)],
        compiler_params=pltpu.CompilerParams(
            dimension_semantics=("parallel", "parallel", "arbitrary")),
        cost_estimate=pl.CostEstimate(
            flops=2 * Mp * N * K,
            transcendentals=0,
            bytes_accessed=Mp * K * 2 + K * N * 2
                           + Mp * N * jnp.dtype(out_dtype).itemsize),
    )(x, w, b)
    return out[:M] if Mp != M else out


def _matmul_ref(x, w, b, act="none", out_dtype=jnp.float32):
    """Precision-matched pure-JAX path (same bf16-in / f32-accumulate flow)."""
    y = jnp.dot(x.astype(jnp.bfloat16), w.astype(jnp.bfloat16),
                preferred_element_type=jnp.float32)
    y = y + jnp.asarray(b, jnp.float32).reshape(1, -1)
    if act == "leaky":
        y = jnp.where(y > 0, y, 0.2 * y)
    elif act == "sigmoid":
        y = jax.nn.sigmoid(y)
    return y.astype(out_dtype)


# ------------------------------ JAX glue ------------------------------------

def _im2col(x, k=4, s=2, p=1):
    """x: (B, H, W, C) NHWC -> (B*Ho*Wo, k*k*C) patches, column order (kh, kw, ci)."""
    B, H, W, C = x.shape
    xp = jnp.pad(x, ((0, 0), (p, p), (p, p), (0, 0)))
    Ho = (H + 2 * p - k) // s + 1
    Wo = (W + 2 * p - k) // s + 1
    cols = []
    for kh in range(k):
        for kw in range(k):
            cols.append(xp[:, kh:kh + s * Ho:s, kw:kw + s * Wo:s, :])
    cols = jnp.concatenate(cols, axis=-1)  # (B, Ho, Wo, k*k*C)
    return cols.reshape(B * Ho * Wo, k * k * C), (B, Ho, Wo)


def conv_block(x_nhwc, w_km, b_row, matmul_fn):
    """Conv2d(k=4, s=2, p=1) [+ folded BN] + LeakyReLU(0.2), via the fused matmul."""
    cols, (B, Ho, Wo) = _im2col(x_nhwc, k=4, s=2, p=1)
    y = matmul_fn(cols, w_km, b_row, act="leaky", out_dtype=jnp.bfloat16)
    return y.reshape(B, Ho, Wo, -1)


def prepare_params(p):
    """One-time inference prep: fold BN, reshape conv weights to (K, N) bf16,
    permute fc weight rows to NHWC flatten order."""
    def fold(w_oihw, b, bn):
        Co, Ci, kh, kw = w_oihw.shape
        wm = jnp.transpose(w_oihw, (2, 3, 1, 0)).reshape(kh * kw * Ci, Co)
        if bn is None:
            scale = jnp.ones((Co,), jnp.float32)
            shift = jnp.zeros((Co,), jnp.float32)
        else:
            gamma, beta, mean, var = bn
            scale = gamma / jnp.sqrt(var + 1e-5)
            shift = beta - mean * scale
        w_folded = (wm * scale[None, :]).astype(jnp.bfloat16)
        b_folded = (b * scale + shift).astype(jnp.float32).reshape(1, Co)
        return w_folded, b_folded

    q = {}
    q["conv1_w"], q["conv1_b"] = fold(p["conv1_w"], p["conv1_b"], None)
    q["conv2_w"], q["conv2_b"] = fold(p["conv2_w"], p["conv2_b"], p["bn2"])
    q["conv3_w"], q["conv3_b"] = fold(p["conv3_w"], p["conv3_b"], p["bn3"])
    # fc weight: PyTorch flattens NCHW (c, h, w); our conv path flattens NHWC
    # (h, w, c).  Permute rows once so no runtime transpose is needed.
    C, Hc, Wc = 256, 4, 4
    q["fc_w"] = (p["fc_w"].reshape(C, Hc, Wc, 1)
                 .transpose(1, 2, 0, 3).reshape(Hc * Wc * C, 1))
    q["fc_b"] = p["fc_b"]
    q["embed_fc_w"] = p["embed_fc_w"]
    q["embed_fc_b"] = p["embed_fc_b"]
    return q


def discriminator_forward(qp, img, embed, matmul_fn=matmul_fused_pallas):
    """img: (B, 3, 32, 32) NCHW, embed: (B, embedding_dim) -> (B, 1) sigmoid scores."""
    B, C, H, W = img.shape

    # embed_fc (K=emb_dim, N=16): left to XLA -- a pallas_call here is pure
    # launch overhead and badly underfills the MXU.
    ef = (embed @ qp["embed_fc_w"] + qp["embed_fc_b"]).reshape(B, 1, 4, 4)
    hi = (jnp.arange(H) * 4) // H                       # nearest-neighbor upsample
    wi = (jnp.arange(W) * 4) // W
    ef = ef[:, :, hi, :][:, :, :, wi]

    x = jnp.concatenate([img, ef], axis=1)              # (B, C+1, H, W) NCHW
    x = jnp.transpose(x, (0, 2, 3, 1)).astype(jnp.bfloat16)  # NHWC, bf16 activations

    x = conv_block(x, qp["conv1_w"], qp["conv1_b"], matmul_fn)
    # TODO(synk): Dropout(0.1) layers are identity (eval-mode forward).
    x = conv_block(x, qp["conv2_w"], qp["conv2_b"], matmul_fn)
    x = conv_block(x, qp["conv3_w"], qp["conv3_b"], matmul_fn)

    # NHWC flatten (fc weight already permuted to match); fc has N=1 so routing
    # it through the MXU kernel would waste >99% of the array -- use XLA.
    xf = x.reshape(B, -1).astype(jnp.float32)
    return jax.nn.sigmoid(xf @ qp["fc_w"] + qp["fc_b"])


# --------------------------- pure-f32 reference ------------------------------

def reference_forward(params, img, embed):
    B, _, H, W = img.shape
    ef = (embed @ params["embed_fc_w"] + params["embed_fc_b"]).reshape(B, 1, 4, 4)
    hi = (jnp.arange(H) * 4) // H
    wi = (jnp.arange(W) * 4) // W
    ef = ef[:, :, hi, :][:, :, :, wi]
    x = jnp.concatenate([img, ef], axis=1)

    def conv(x, w, b):
        y = lax.conv_general_dilated(x, w, (2, 2), [(1, 1), (1, 1)],
                                     dimension_numbers=("NCHW", "OIHW", "NCHW"))
        return y + b.reshape(1, -1, 1, 1)

    def bn(x, p):
        g, be, m, v = (a.reshape(1, -1, 1, 1) for a in p)
        return (x - m) / jnp.sqrt(v + 1e-5) * g + be

    def lrelu(x):
        return jnp.where(x > 0, x, 0.2 * x)

    x = lrelu(conv(x, params["conv1_w"], params["conv1_b"]))
    x = lrelu(bn(conv(x, params["conv2_w"], params["conv2_b"]), params["bn2"]))
    x = lrelu(bn(conv(x, params["conv3_w"], params["conv3_b"]), params["bn3"]))
    x = x.reshape(B, -1)
    return jax.nn.sigmoid(x @ params["fc_w"] + params["fc_b"])


# ------------------------------ params / main --------------------------------

def init_params(key, embedding_dim, image_channels=3):
    ks = jax.random.split(key, 10)
    cin = image_channels + 1
    return {
        "embed_fc_w": 0.05 * jax.random.normal(ks[0], (embedding_dim, 16), jnp.float32),
        "embed_fc_b": 0.01 * jax.random.normal(ks[1], (16,), jnp.float32),
        "conv1_w": 0.05 * jax.random.normal(ks[2], (64, cin, 4, 4), jnp.float32),
        "conv1_b": 0.01 * jax.random.normal(ks[3], (64,), jnp.float32),
        "conv2_w": 0.05 * jax.random.normal(ks[4], (128, 64, 4, 4), jnp.float32),
        "conv2_b": 0.01 * jax.random.normal(ks[5], (128,), jnp.float32),
        "conv3_w": 0.05 * jax.random.normal(ks[6], (256, 128, 4, 4), jnp.float32),
        "conv3_b": 0.01 * jax.random.normal(ks[7], (256,), jnp.float32),
        "fc_w": 0.05 * jax.random.normal(ks[8], (256 * 4 * 4, 1), jnp.float32),
        "fc_b": 0.01 * jax.random.normal(ks[9], (1,), jnp.float32),
        # BatchNorm (eval mode): gamma, beta, running_mean, running_var
        "bn2": (jnp.ones((128,)), jnp.zeros((128,)), jnp.zeros((128,)), jnp.ones((128,))),
        "bn3": (jnp.ones((256,)), jnp.zeros((256,)), jnp.zeros((256,)), jnp.ones((256,))),
    }


if __name__ == "__main__":
    key = jax.random.PRNGKey(0)
    k_img, k_emb, k_par = jax.random.split(key, 3)

    embedding_dim = 8
    B = 2
    img = jax.random.normal(k_img, (B, 3, 32, 32), jnp.float32)   # 32x32 -> 4x4 after 3 stride-2 convs
    embed = jax.random.normal(k_emb, (B, embedding_dim), jnp.float32)
    params = init_params(k_par, embedding_dim)
    qparams = prepare_params(params)

    fwd = jax.jit(discriminator_forward)
    out = jax.block_until_ready(fwd(qparams, img, embed))
    assert out.shape == (B, 1), out.shape

    # 1) precision-matched pure-JAX path (same bf16 matmul flow, no Pallas): tight check
    matched = jax.block_until_ready(
        discriminator_forward(qparams, img, embed, matmul_fn=_matmul_ref))
    assert jnp.allclose(out, matched, rtol=2e-3, atol=2e-3), (out, matched)

    # 2) full-f32 reference (lax.conv): looser tolerance covers the bf16 MXU inputs
    ref = jax.block_until_ready(reference_forward(params, img, embed))
    assert jnp.allclose(out, ref, rtol=3e-2, atol=3e-2), (out, ref)

    print("KERNEL_OK")
</pallas_src>

<mosaic_0001>
module attributes {stable_mosaic.version = 11 : i64} {
  func.func @_matmul_kernel(%arg0: i32, %arg1: i32, %arg2: i32, %arg3: memref<256x64xbf16, #tpu.memory_space<vmem>>, %arg4: memref<64x64xbf16, #tpu.memory_space<vmem>>, %arg5: memref<1x64xf32, #tpu.memory_space<vmem>>, %arg6: memref<256x64xbf16, #tpu.memory_space<vmem>>, %arg7: memref<256x64xf32, #tpu.memory_space<vmem>>) attributes {dimension_semantics = [#tpu.dimension_semantics<parallel>, #tpu.dimension_semantics<parallel>, #tpu.dimension_semantics<arbitrary>], iteration_bounds = array<i64: 2, 1, 1>, scalar_prefetch = 0 : i64, scratch_operands = 1 : i64, tpu.core_type = #tpu.core_type<tc>, window_params = [{transform_indices = @transform_0, window_bounds = array<i64: 256, 64>}, {transform_indices = @transform_1, window_bounds = array<i64: 64, 64>}, {transform_indices = @transform_2, window_bounds = array<i64: 1, 64>}, {transform_indices = @transform_3, window_bounds = array<i64: 256, 64>}]} {
    %c0_i32 = arith.constant 0 : i32
    %0 = arith.cmpi eq, %arg2, %c0_i32 : i32
    %1 = arith.extui %0 : i1 to i32
    %c0_i32_0 = arith.constant 0 : i32
    %2 = arith.cmpi ne, %1, %c0_i32_0 : i32
    scf.if %2 {
      %cst_10 = arith.constant 0.000000e+00 : f32
      %12 = vector.broadcast %cst_10 : f32 to vector<256x64xf32>
      %c0_11 = arith.constant 0 : index
      %c0_12 = arith.constant 0 : index
      %13 = vector.load %arg7[%c0_11, %c0_12] : memref<256x64xf32, #tpu.memory_space<vmem>>, vector<256x64xf32>
      tpu.vector_store %arg7[%c0_11, %c0_12], %12 {strides = array<i32>} : memref<256x64xf32, #tpu.memory_space<vmem>>, vector<256x64xf32>,
    } else {
    }
    %c0 = arith.constant 0 : index
    %c0_1 = arith.constant 0 : index
    %3 = vector.load %arg7[%c0, %c0_1] : memref<256x64xf32, #tpu.memory_space<vmem>>, vector<256x64xf32>
    %c0_2 = arith.constant 0 : index
    %c0_3 = arith.constant 0 : index
    %4 = vector.load %arg3[%c0_2, %c0_3] : memref<256x64xbf16, #tpu.memory_space<vmem>>, vector<256x64xbf16>
    %c0_4 = arith.constant 0 : index
    %c0_5 = arith.constant 0 : index
    %5 = vector.load %arg4[%c0_4, %c0_5] : memref<64x64xbf16, #tpu.memory_space<vmem>>, vector<64x64xbf16>
    %cst = arith.constant dense<0.000000e+00> : vector<256x64xf32>
    %6 = tpu.matmul %4, %5, %cst {dimension_numbers = #tpu.dot_dimension_numbers<[1], [0], [0], [1], [0, 0, 1, 1], [], []>} : vector<256x64xbf16>, vector<64x64xbf16>, vector<256x64xf32> -> vector<256x64xf32>
    %7 = arith.addf %3, %6 : vector<256x64xf32>
    %c0_6 = arith.constant 0 : index
    %c0_7 = arith.constant 0 : index
    %8 = vector.load %arg7[%c0_6, %c0_7] : memref<256x64xf32, #tpu.memory_space<vmem>>, vector<256x64xf32>
    tpu.vector_store %arg7[%c0_6, %c0_7], %7 {strides = array<i32>} : memref<256x64xf32, #tpu.memory_space<vmem>>, vector<256x64xf32>,
    %c0_i32_8 = arith.constant 0 : i32
    %9 = arith.cmpi eq, %arg2, %c0_i32_8 : i32
    %10 = arith.extui %9 : i1 to i32
    %c0_i32_9 = arith.constant 0 : i32
    %11 = arith.cmpi ne, %10, %c0_i32_9 : i32
    scf.if %11 {
      %c0_10 = arith.constant 0 : index
      %c0_11 = arith.constant 0 : index
      %12 = vector.load %arg7[%c0_10, %c0_11] : memref<256x64xf32, #tpu.memory_space<vmem>>, vector<256x64xf32>
      %c0_12 = arith.constant 0 : index
      %c0_13 = arith.constant 0 : index
      %13 = vector.load %arg5[%c0_12, %c0_13] : memref<1x64xf32, #tpu.memory_space<vmem>>, vector<1x64xf32>
      %14 = vector.broadcast %13 : vector<1x64xf32> to vector<256x64xf32>
      %15 = arith.addf %12, %14 : vector<256x64xf32>
      %cst_14 = arith.constant 0.000000e+00 : f32
      %16 = vector.broadcast %cst_14 : f32 to vector<256x64xf32>
      %17 = arith.cmpf ogt, %15, %16 : vector<256x64xf32>
      %cst_15 = arith.constant 2.000000e-01 : f32
      %18 = vector.broadcast %cst_15 : f32 to vector<256x64xf32>
      %19 = arith.mulf %18, %15 : vector<256x64xf32>
      %20 = arith.select %17, %15, %19 : vector<256x64xi1>, vector<256x64xf32>
      %21 = arith.truncf %20 : vector<256x64xf32> to vector<256x64xbf16>
      %c0_16 = arith.constant 0 : index
      %c0_17 = arith.constant 0 : index
      %22 = vector.load %arg6[%c0_16, %c0_17] : memref<256x64xbf16, #tpu.memory_space<vmem>>, vector<256x64xbf16>
      tpu.vector_store %arg6[%c0_16, %c0_17], %21 {strides = array<i32>} : memref<256x64xbf16, #tpu.memory_space<vmem>>, vector<256x64xbf16>,
    } else {
    }
    return
  }
  func.func @transform_0(%arg0: i32, %arg1: i32, %arg2: i32) -> (i32, i32) {
    %c0_i32 = arith.constant 0 : i32
    return %arg0, %arg2 : i32, i32
  }
  func.func @transform_1(%arg0: i32, %arg1: i32, %arg2: i32) -> (i32, i32) {
    %c0_i32 = arith.constant 0 : i32
    return %arg2, %arg1 : i32, i32
  }
  func.func @transform_2(%arg0: i32, %arg1: i32, %arg2: i32) -> (i32, i32) {
    %c0_i32 = arith.constant 0 : i32
    %c0_i32_0 = arith.constant 0 : i32
    return %c0_i32, %arg1 : i32, i32
  }
  func.func @transform_3(%arg0: i32, %arg1: i32, %arg2: i32) -> (i32, i32) {
    %c0_i32 = arith.constant 0 : i32
    return %arg0, %arg1 : i32, i32
  }
}

module attributes {stable_mosaic.version = 11 : i64} {
  func.func @_matmul_kernel(%arg0: i32, %arg1: i32, %arg2: i32, %arg3: memref<128x512xbf16, #tpu.memory_space<vmem>>, %arg4: memref<512x128xbf16, #tpu.memory_space<vmem>>, %arg5: memref<1x128xf32, #tpu.memory_space<vmem>>, %arg6: memref<128x128xbf16, #tpu.memory_space<vmem>>, %arg7: memref<128x128xf32, #tpu.memory_space<vmem>>) attributes {dimension_semantics = [#tpu.dimension_semantics<parallel>, #tpu.dimension_semantics<parallel>, #tpu.dimension_semantics<arbitrary>], iteration_bounds = array<i64: 1, 1, 2>, scalar_prefetch = 0 : i64, scratch_operands = 1 : i64, tpu.core_type = #tpu.core_type<tc>, window_params = [{transform_indices = @transform_0, window_bounds = array<i64: 128, 512>}, {transform_indices = @transform_1, window_bounds = array<i64: 512, 128>}, {transform_indices = @transform_2, window_bounds = array<i64: 1, 128>}, {transform_indices = @transform_3, window_bounds = array<i64: 128, 128>}]} {
    %c0_i32 = arith.constant 0 : i32
    %0 = arith.cmpi eq, %arg2, %c0_i32 : i32
    %1 = arith.extui %0 : i1 to i32
    %c0_i32_0 = arith.constant 0 : i32
    %2 = arith.cmpi ne, %1, %c0_i32_0 : i32
    scf.if %2 {
      %cst_9 = arith.constant 0.000000e+00 : f32
      %12 = vector.broadcast %cst_9 : f32 to vector<128x128xf32>
      %c0_10 = arith.constant 0 : index
      %c0_11 = arith.constant 0 : index
      %13 = vector.load %arg7[%c0_10, %c0_11] : memref<128x128xf32, #tpu.memory_space<vmem>>, vector<128x128xf32>
      tpu.vector_store %arg7[%c0_10, %c0_11], %12 {strides = array<i32>} : memref<128x128xf32, #tpu.memory_space<vmem>>, vector<128x128xf32>,
    } else {
    }
    %c0 = arith.constant 0 : index
    %c0_1 = arith.constant 0 : index
    %3 = vector.load %arg7[%c0, %c0_1] : memref<128x128xf32, #tpu.memory_space<vmem>>, vector<128x128xf32>
    %c0_2 = arith.constant 0 : index
    %c0_3 = arith.constant 0 : index
    %4 = vector.load %arg3[%c0_2, %c0_3] : memref<128x512xbf16, #tpu.memory_space<vmem>>, vector<128x512xbf16>
    %c0_4 = arith.constant 0 : index
    %c0_5 = arith.constant 0 : index
    %5 = vector.load %arg4[%c0_4, %c0_5] : memref<512x128xbf16, #tpu.memory_space<vmem>>, vector<512x128xbf16>
    %cst = arith.constant dense<0.000000e+00> : vector<128x128xf32>
    %6 = tpu.matmul %4, %5, %cst {dimension_numbers = #tpu.dot_dimension_numbers<[1], [0], [0], [1], [0, 0, 1, 1], [], []>} : vector<128x512xbf16>, vector<512x128xbf16>, vector<128x128xf32> -> vector<128x128xf32>
    %7 = arith.addf %3, %6 : vector<128x128xf32>
    %c0_6 = arith.constant 0 : index
    %c0_7 = arith.constant 0 : index
    %8 = vector.load %arg7[%c0_6, %c0_7] : memref<128x128xf32, #tpu.memory_space<vmem>>, vector<128x128xf32>
    tpu.vector_store %arg7[%c0_6, %c0_7], %7 {strides = array<i32>} : memref<128x128xf32, #tpu.memory_space<vmem>>, vector<128x128xf32>,
    %c1_i32 = arith.constant 1 : i32
    %9 = arith.cmpi eq, %arg2, %c1_i32 : i32
    %10 = arith.extui %9 : i1 to i32
    %c0_i32_8 = arith.constant 0 : i32
    %11 = arith.cmpi ne, %10, %c0_i32_8 : i32
    scf.if %11 {
      %c0_9 = arith.constant 0 : index
      %c0_10 = arith.constant 0 : index
      %12 = vector.load %arg7[%c0_9, %c0_10] : memref<128x128xf32, #tpu.memory_space<vmem>>, vector<128x128xf32>
      %c0_11 = arith.constant 0 : index
      %c0_12 = arith.constant 0 : index
      %13 = vector.load %arg5[%c0_11, %c0_12] : memref<1x128xf32, #tpu.memory_space<vmem>>, vector<1x128xf32>
      %14 = vector.broadcast %13 : vector<1x128xf32> to vector<128x128xf32>
      %15 = arith.addf %12, %14 : vector<128x128xf32>
      %cst_13 = arith.constant 0.000000e+00 : f32
      %16 = vector.broadcast %cst_13 : f32 to vector<128x128xf32>
      %17 = arith.cmpf ogt, %15, %16 : vector<128x128xf32>
      %cst_14 = arith.constant 2.000000e-01 : f32
      %18 = vector.broadcast %cst_14 : f32 to vector<128x128xf32>
      %19 = arith.mulf %18, %15 : vector<128x128xf32>
      %20 = arith.select %17, %15, %19 : vector<128x128xi1>, vector<128x128xf32>
      %21 = arith.truncf %20 : vector<128x128xf32> to vector<128x128xbf16>
      %c0_15 = arith.constant 0 : index
      %c0_16 = arith.constant 0 : index
      %22 = vector.load %arg6[%c0_15, %c0_16] : memref<128x128xbf16, #tpu.memory_space<vmem>>, vector<128x128xbf16>
      tpu.vector_store %arg6[%c0_15, %c0_16], %21 {strides = array<i32>} : memref<128x128xbf16, #tpu.memory_space<vmem>>, vector<128x128xbf16>,
    } else {
    }
    return
  }
  func.func @transform_0(%arg0: i32, %arg1: i32, %arg2: i32) -> (i32, i32) {
    %c0_i32 = arith.constant 0 : i32
    return %arg0, %arg2 : i32, i32
  }
  func.func @transform_1(%arg0: i32, %arg1: i32, %arg2: i32) -> (i32, i32) {
    %c0_i32 = arith.constant 0 : i32
    return %arg2, %arg1 : i32, i32
  }
  func.func @transform_2(%arg0: i32, %arg1: i32, %arg2: i32) -> (i32, i32) {
    %c0_i32 = arith.constant 0 : i32
    %c0_i32_0 = arith.constant 0 : i32
    return %c0_i32, %arg1 : i32, i32
  }
  func.func @transform_3(%arg0: i32, %arg1: i32, %arg2: i32) -> (i32, i32) {
    %c0_i32 = arith.constant 0 : i32
    return %arg0, %arg1 : i32, i32
  }
}

module attributes {stable_mosaic.version = 11 : i64} {
  func.func @_matmul_kernel(%arg0: i32, %arg1: i32, %arg2: i32, %arg3: memref<32x512xbf16, #tpu.memory_space<vmem>>, %arg4: memref<512x256xbf16, #tpu.memory_space<vmem>>, %arg5: memref<1x256xf32, #tpu.memory_space<vmem>>, %arg6: memref<32x256xbf16, #tpu.memory_space<vmem>>, %arg7: memref<32x256xf32, #tpu.memory_space<vmem>>) attributes {dimension_semantics = [#tpu.dimension_semantics<parallel>, #tpu.dimension_semantics<parallel>, #tpu.dimension_semantics<arbitrary>], iteration_bounds = array<i64: 1, 1, 4>, scalar_prefetch = 0 : i64, scratch_operands = 1 : i64, tpu.core_type = #tpu.core_type<tc>, window_params = [{transform_indices = @transform_0, window_bounds = array<i64: 32, 512>}, {transform_indices = @transform_1, window_bounds = array<i64: 512, 256>}, {transform_indices = @transform_2, window_bounds = array<i64: 1, 256>}, {transform_indices = @transform_3, window_bounds = array<i64: 32, 256>}]} {
    %c0_i32 = arith.constant 0 : i32
    %0 = arith.cmpi eq, %arg2, %c0_i32 : i32
    %1 = arith.extui %0 : i1 to i32
    %c0_i32_0 = arith.constant 0 : i32
    %2 = arith.cmpi ne, %1, %c0_i32_0 : i32
    scf.if %2 {
      %cst_9 = arith.constant 0.000000e+00 : f32
      %12 = vector.broadcast %cst_9 : f32 to vector<32x256xf32>
      %c0_10 = arith.constant 0 : index
      %c0_11 = arith.constant 0 : index
      %13 = vector.load %arg7[%c0_10, %c0_11] : memref<32x256xf32, #tpu.memory_space<vmem>>, vector<32x256xf32>
      tpu.vector_store %arg7[%c0_10, %c0_11], %12 {strides = array<i32>} : memref<32x256xf32, #tpu.memory_space<vmem>>, vector<32x256xf32>,
    } else {
    }
    %c0 = arith.constant 0 : index
    %c0_1 = arith.constant 0 : index
    %3 = vector.load %arg7[%c0, %c0_1] : memref<32x256xf32, #tpu.memory_space<vmem>>, vector<32x256xf32>
    %c0_2 = arith.constant 0 : index
    %c0_3 = arith.constant 0 : index
    %4 = vector.load %arg3[%c0_2, %c0_3] : memref<32x512xbf16, #tpu.memory_space<vmem>>, vector<32x512xbf16>
    %c0_4 = arith.constant 0 : index
    %c0_5 = arith.constant 0 : index
    %5 = vector.load %arg4[%c0_4, %c0_5] : memref<512x256xbf16, #tpu.memory_space<vmem>>, vector<512x256xbf16>
    %cst = arith.constant dense<0.000000e+00> : vector<32x256xf32>
    %6 = tpu.matmul %4, %5, %cst {dimension_numbers = #tpu.dot_dimension_numbers<[1], [0], [0], [1], [0, 0, 1, 1], [], []>} : vector<32x512xbf16>, vector<512x256xbf16>, vector<32x256xf32> -> vector<32x256xf32>
    %7 = arith.addf %3, %6 : vector<32x256xf32>
    %c0_6 = arith.constant 0 : index
    %c0_7 = arith.constant 0 : index
    %8 = vector.load %arg7[%c0_6, %c0_7] : memref<32x256xf32, #tpu.memory_space<vmem>>, vector<32x256xf32>
    tpu.vector_store %arg7[%c0_6, %c0_7], %7 {strides = array<i32>} : memref<32x256xf32, #tpu.memory_space<vmem>>, vector<32x256xf32>,
    %c3_i32 = arith.constant 3 : i32
    %9 = arith.cmpi eq, %arg2, %c3_i32 : i32
    %10 = arith.extui %9 : i1 to i32
    %c0_i32_8 = arith.constant 0 : i32
    %11 = arith.cmpi ne, %10, %c0_i32_8 : i32
    scf.if %11 {
      %c0_9 = arith.constant 0 : index
      %c0_10 = arith.constant 0 : index
      %12 = vector.load %arg7[%c0_9, %c0_10] : memref<32x256xf32, #tpu.memory_space<vmem>>, vector<32x256xf32>
      %c0_11 = arith.constant 0 : index
      %c0_12 = arith.constant 0 : index
      %13 = vector.load %arg5[%c0_11, %c0_12] : memref<1x256xf32, #tpu.memory_space<vmem>>, vector<1x256xf32>
      %14 = vector.broadcast %13 : vector<1x256xf32> to vector<32x256xf32>
      %15 = arith.addf %12, %14 : vector<32x256xf32>
      %cst_13 = arith.constant 0.000000e+00 : f32
      %16 = vector.broadcast %cst_13 : f32 to vector<32x256xf32>
      %17 = arith.cmpf ogt, %15, %16 : vector<32x256xf32>
      %cst_14 = arith.constant 2.000000e-01 : f32
      %18 = vector.broadcast %cst_14 : f32 to vector<32x256xf32>
      %19 = arith.mulf %18, %15 : vector<32x256xf32>
      %20 = arith.select %17, %15, %19 : vector<32x256xi1>, vector<32x256xf32>
      %21 = arith.truncf %20 : vector<32x256xf32> to vector<32x256xbf16>
      %c0_15 = arith.constant 0 : index
      %c0_16 = arith.constant 0 : index
      %22 = vector.load %arg6[%c0_15, %c0_16] : memref<32x256xbf16, #tpu.memory_space<vmem>>, vector<32x256xbf16>
      tpu.vector_store %arg6[%c0_15, %c0_16], %21 {strides = array<i32>} : memref<32x256xbf16, #tpu.memory_space<vmem>>, vector<32x256xbf16>,
    } else {
    }
    return
  }
  func.func @transform_0(%arg0: i32, %arg1: i32, %arg2: i32) -> (i32, i32) {
    %c0_i32 = arith.constant 0 : i32
    return %arg0, %arg2 : i32, i32
  }
  func.func @transform_1(%arg0: i32, %arg1: i32, %arg2: i32) -> (i32, i32) {
    %c0_i32 = arith.constant 0 : i32
    return %arg2, %arg1 : i32, i32
  }
  func.func @transform_2(%arg0: i32, %arg1: i32, %arg2: i32) -> (i32, i32) {
    %c0_i32 = arith.constant 0 : i32
    %c0_i32_0 = arith.constant 0 : i32
    return %c0_i32, %arg1 : i32, i32
  }
  func.func @transform_3(%arg0: i32, %arg1: i32, %arg2: i32) -> (i32, i32) {
    %c0_i32 = arith.constant 0 : i32
    return %arg0, %arg1 : i32, i32
  }
}

</mosaic_0001>

<bundles_post_ra>
// kernel: discriminator_forward.3
= control target key start
LH: loop header
LB: loop body
LE: loop exit
PB: predicated region body
PF: predicated region fallthrough
CT: control target
= control target key end

     0   :  { %s1230_s12 = smov 0   ;;  %s1232_s13 = smov 0   ;;  %s1483_s0 = inlined_call_operand.vmem [shape: bf16[512,64], index: 0, kind: input, shape index: {}]   ;;  %s1484_s1 = inlined_call_operand.vmem [shape: bf16[64,64], index: 1, kind: input, shape index: {}]   ;;  %s1485_s2 = inlined_call_operand.vmem [shape: f32[1,64], index: 2, kind: input, shape index: {}]   ;;  %s1486_s3 = inlined_call_operand.vmem [shape: bf16[512,64], index: 3, kind: output, shape index: {}]  }
   0x1   :  { %s1234_s14 = smov 0  }
   0x2 LB: > { %s32_s15 = sadd.s32 1, %s1203_s13  ;;  %p1024_p0 = scmp.ge.s32.totalorder %s1207_s14, 1  ;;  %s1207_s14 = sphi %s1234_s14, %s13_s14   ;;  %s1203_s13 = sphi %s1232_s13, %s1488_s13   ;;  %s1199_s12 = sphi %s1230_s12, %s1487_s12  }
   0x3   : > { %p34_p1 = scmp.ge.s32.totalorder %s32_s15, 2  ;;  %p188_p2 = scmp.lt.s32.totalorder %s1207_s14, 3 }
   0x5   : > { %s1490_s15 = smov (%p34_p1, %s32_s15), 0  ;;  %p189_p3 = pnand %p1024_p0, %p188_p2 }
   0x6   : > { %s1025_s18 = sshll.u32 (!%p189_p3), %s1199_s12, 5 }
   0x7   : > { %192 = sbr.rel (%p189_p3) target bundleno = 239 (0xef), region = 32  ;;  %p230_p4 = scmp.lt.s32.totalorder (!%p189_p3), %s1025_s18, 63 }
   0xc   : > { %v1146_v0 = vld [vmem:[%s1484_s1 + $0x18] sm:$0xff]  ;;  %v1145_v1 = vld [vmem:[%s1484_s1 + $0x10] sm:$0xff]  ;;  %s1492_s18 = smov (!%p230_p4, %s1025_s18), 63  ;;  %v1144_v2 = vld [vmem:[%s1484_s1 + $0x8] sm:$0xff]  ;;  %vm264_vm0 = vcmask 523264   ;;  %v1209_v12 = vmov 0.0  }
   0xd   : > { %526 = vmatpush.bf16.msra.mxu0 %v1146_v0  ;;  %1147 = vmatpush.bf16.msra.mxu1 %v1146_v0  ;;  %s1026_s23 = sshll.u32 %s1492_s18, 2  ;;  %v1143_v3 = vld [vmem:[%s1484_s1] sm:$0xff]  ;;  %265 = vst.msk [vmem:[#allocation2] sm:$0xff] %vm264_vm0, %v1209_v12  ;;  %vm874_vm3 = vcmask 519168  }
   0xe   : > { %1148 = vmatpush.bf16.msra.mxu2 %v1146_v0  ;;  %1149 = vmatpush.bf16.msra.mxu3 %v1146_v0  ;;  %s1268_s28 = scalar_lea.vmem %s1483_s0, %s1026_s23  ;;  %266 = vst.msk [vmem:[#allocation2 + $0x8] sm:$0xff] %vm264_vm0, %v1209_v12  ;;  %v1339_v31 = vld [vmem:[%s1485_s2] ss:$0 sm:$0xff]  ;;  %s1352_s6 = scalar_lea.vmem %s1486_s3, %s1026_s23 }
   0xf   : > { %v1127_v4 = vld [vmem:[%s1268_s28] sm:$0xff]  ;;  %v1128_v8 = vld [vmem:[%s1268_s28 + $0x8] sm:$0xff]  ;;  %267 = vst.msk [vmem:[#allocation2 + $0x10] sm:$0xff] %vm264_vm0, %v1209_v12  ;;  %v1129_v13 = vld [vmem:[%s1268_s28 + $0x10] sm:$0xff] }
  0x10   : > { %v1131_v5 = vld [vmem:[%s1268_s28 + $0x20] sm:$0xff]  ;;  %v1132_v9 = vld [vmem:[%s1268_s28 + $0x28] sm:$0xff]  ;;  %268 = vst.msk [vmem:[#allocation2 + $0x18] sm:$0xff] %vm264_vm0, %v1209_v12  ;;  %v1133_v14 = vld [vmem:[%s1268_s28 + $0x30] sm:$0xff] }
  0x11   : > { %527 = vmatpush.bf16.msra.mxu0 %v1145_v1  ;;  %1150 = vmatpush.bf16.msra.mxu1 %v1145_v1  ;;  %v1135_v6 = vld [vmem:[%s1268_s28 + $0x40] sm:$0xff]  ;;  %v1136_v10 = vld [vmem:[%s1268_s28 + $0x48] sm:$0xff]  ;;  %269 = vst.msk [vmem:[#allocation2 + $0x20] sm:$0xff] %vm264_vm0, %v1209_v12  ;;  %v1137_v15 = vld [vmem:[%s1268_s28 + $0x50] sm:$0xff] }
  0x12   : > { %1151 = vmatpush.bf16.msra.mxu2 %v1145_v1  ;;  %1152 = vmatpush.bf16.msra.mxu3 %v1145_v1  ;;  %v1139_v7 = vld [vmem:[%s1268_s28 + $0x60] sm:$0xff]  ;;  %v1140_v11 = vld [vmem:[%s1268_s28 + $0x68] sm:$0xff]  ;;  %270 = vst.msk [vmem:[#allocation2 + $0x28] sm:$0xff] %vm264_vm0, %v1209_v12  ;;  %v1141_v16 = vld [vmem:[%s1268_s28 + $0x70] sm:$0xff] }
  0x13   : > { %271 = vst.msk [vmem:[#allocation2 + $0x30] sm:$0xff] %vm264_vm0, %v1209_v12  ;;  %v1130_v17 = vld [vmem:[%s1268_s28 + $0x18] sm:$0xff] }
  0x14   : > { %272 = vst.msk [vmem:[#allocation2 + $0x38] sm:$0xff] %vm264_vm0, %v1209_v12  ;;  %v1134_v18 = vld [vmem:[%s1268_s28 + $0x38] sm:$0xff]  ;;  %v297_v21 = vld [vmem:[#allocation2] sm:$0xff] }
  0x15   : > { %528 = vmatpush.bf16.msra.mxu0 %v1144_v2  ;;  %1153 = vmatpush.bf16.msra.mxu1 %v1144_v2  ;;  %273 = vst.msk [vmem:[#allocation2 + $0x40] sm:$0xff] %vm264_vm0, %v1209_v12  ;;  %v1138_v19 = vld [vmem:[%s1268_s28 + $0x58] sm:$0xff]  ;;  %v298_v29 = vld [vmem:[#allocation2 + $0x8] sm:$0xff] }
  0x16   : > { %1154 = vmatpush.bf16.msra.mxu2 %v1144_v2  ;;  %1155 = vmatpush.bf16.msra.mxu3 %v1144_v2  ;;  %274 = vst.msk [vmem:[#allocation2 + $0x48] sm:$0xff] %vm264_vm0, %v1209_v12  ;;  %v1142_v20 = vld [vmem:[%s1268_s28 + $0x78] sm:$0xff]  ;;  %v299_v51 = vld [vmem:[#allocation2 + $0x10] sm:$0xff] }
  0x17   : > { %275 = vst.msk [vmem:[#allocation2 + $0x50] sm:$0xff] %vm264_vm0, %v1209_v12 }
  0x18   : > { %276 = vst.msk [vmem:[#allocation2 + $0x58] sm:$0xff] %vm264_vm0, %v1209_v12 }
  0x19   : > { %529 = vmatpush.bf16.msra.mxu0 %v1143_v3  ;;  %1156 = vmatpush.bf16.msra.mxu1 %v1143_v3  ;;  %277 = vst.msk [vmem:[#allocation2 + $0x60] sm:$0xff] %vm264_vm0, %v1209_v12 }
  0x1a   : > { %1157 = vmatpush.bf16.msra.mxu2 %v1143_v3  ;;  %1158 = vmatpush.bf16.msra.mxu3 %v1143_v3  ;;  %278 = vst.msk [vmem:[#allocation2 + $0x68] sm:$0xff] %vm264_vm0, %v1209_v12 }
  0x1b   : > { %279 = vst.msk [vmem:[#allocation2 + $0x70] sm:$0xff] %vm264_vm0, %v1209_v12 }
  0x1c   : > { %1109 = vmatmul.msk.bf16.vlgmr.msra.gmra.mxu0 %vm264_vm0, %v1127_v4  ;;  %1113 = vmatmul.msk.bf16.vlgmr.msra.gmra.mxu1 %vm264_vm0, %v1131_v5  ;;  %280 = vst.msk [vmem:[#allocation2 + $0x78] sm:$0xff] %vm264_vm0, %v1209_v12  ;;  %v305_v22 = vld [vmem:[#allocation2 + $0x40] sm:$0xff] }
  0x1d   : > { %1117 = vmatmul.msk.bf16.vlgmr.msra.gmra.mxu2 %vm264_vm0, %v1135_v6  ;;  %1121 = vmatmul.msk.bf16.vlgmr.msra.gmra.mxu3 %vm264_vm0, %v1139_v7  ;;  %281 = vst.msk [vmem:[#allocation2 + $0x80] sm:$0xff] %vm264_vm0, %v1209_v12  ;;  %v306_v30 = vld [vmem:[#allocation2 + $0x48] sm:$0xff] }
  0x1e   : > { %282 = vst.msk [vmem:[#allocation2 + $0x88] sm:$0xff] %vm264_vm0, %v1209_v12  ;;  %v307_v56 = vld [vmem:[#allocation2 + $0x50] sm:$0xff] }
  0x1f   : > { %283 = vst.msk [vmem:[#allocation2 + $0x90] sm:$0xff] %vm264_vm0, %v1209_v12 }
  0x20   : > { %284 = vst.msk [vmem:[#allocation2 + $0x98] sm:$0xff] %vm264_vm0, %v1209_v12 }
  0x21   : > { %285 = vst.msk [vmem:[#allocation2 + $0xa0] sm:$0xff] %vm264_vm0, %v1209_v12 }
  0x22   : > { %286 = vst.msk [vmem:[#allocation2 + $0xa8] sm:$0xff] %vm264_vm0, %v1209_v12 }
  0x23   : > { %287 = vst.msk [vmem:[#allocation2 + $0xb0] sm:$0xff] %vm264_vm0, %v1209_v12 }
  0x24   : > { %288 = vst.msk [vmem:[#allocation2 + $0xb8] sm:$0xff] %vm264_vm0, %v1209_v12  ;;  %v313_v27 = vld [vmem:[#allocation2 + $0x80] sm:$0xff] }
  0x25   : > { %289 = vst.msk [vmem:[#allocation2 + $0xc0] sm:$0xff] %vm264_vm0, %v1209_v12  ;;  %v314_v45 = vld [vmem:[#allocation2 + $0x88] sm:$0xff] }
  0x26   : > { %290 = vst.msk [vmem:[#allocation2 + $0xc8] sm:$0xff] %vm264_vm0, %v1209_v12 }
  0x27   : > { %291 = vst.msk [vmem:[#allocation2 + $0xd0] sm:$0xff] %vm264_vm0, %v1209_v12 }
  0x28   : > { %292 = vst.msk [vmem:[#allocation2 + $0xd8] sm:$0xff] %vm264_vm0, %v1209_v12 }
  0x29   : > { %293 = vst.msk [vmem:[#allocation2 + $0xe0] sm:$0xff] %vm264_vm0, %v1209_v12 }
  0x2a   : > { %294 = vst.msk [vmem:[#allocation2 + $0xe8] sm:$0xff] %vm264_vm0, %v1209_v12 }
  0x2b   : > { %295 = vst.msk [vmem:[#allocation2 + $0xf0] sm:$0xff] %vm264_vm0, %v1209_v12 }
  0x2c   : > { %1110 = vmatmul.msk.bf16.gmra.mxu0 %vm264_vm0, %v1128_v8  ;;  %1114 = vmatmul.msk.bf16.gmra.mxu1 %vm264_vm0, %v1132_v9  ;;  %296 = vst.msk [vmem:[#allocation2 + $0xf8] sm:$0xff] %vm264_vm0, %v1209_v12  ;;  %v321_v28 = vld [vmem:[#allocation2 + $0xc0] sm:$0xff] }
  0x2d   : > { %1118 = vmatmul.msk.bf16.gmra.mxu2 %vm264_vm0, %v1136_v10  ;;  %1122 = vmatmul.msk.bf16.gmra.mxu3 %vm264_vm0, %v1140_v11  ;;  %v322_v47 = vld [vmem:[#allocation2 + $0xc8] sm:$0xff]  ;;  %v315_v10 = vld [vmem:[#allocation2 + $0x90] sm:$0xff] }
  0x3c   : > { %1111 = vmatmul.msk.bf16.gmra.mxu0 %vm264_vm0, %v1129_v13  ;;  %1115 = vmatmul.msk.bf16.gmra.mxu1 %vm264_vm0, %v1133_v14 }
  0x3d   : > { %1119 = vmatmul.msk.bf16.gmra.mxu2 %vm264_vm0, %v1137_v15  ;;  %1123 = vmatmul.msk.bf16.gmra.mxu3 %vm264_vm0, %v1141_v16  ;;  %v323_v15 = vld [vmem:[#allocation2 + $0xd0] sm:$0xff] }
  0x4c   : > { %1112 = vmatmul.msk.bf16.gmra.mxu0 %vm264_vm0, %v1130_v17  ;;  %1116 = vmatmul.msk.bf16.gmra.mxu1 %vm264_vm0, %v1134_v18 }
  0x4d   : > { %1120 = vmatmul.msk.bf16.gmra.mxu2 %vm264_vm0, %v1138_v19  ;;  %1124 = vmatmul.msk.bf16.gmra.mxu3 %vm264_vm0, %v1142_v20  ;;  %v300_v19 = vld [vmem:[#allocation2 + $0x18] sm:$0xff] }
  0x99   : > { %v531_v23 = vpop.f32.mrf.mxu0  ;;  %v551_v24 = vpop.f32.mrf.mxu1 }
  0x9a   : > { %v611_v25 = vadd.f32 %v531_v23, %v297_v21  ;;  %v619_v26 = vadd.f32 %v551_v24, %v305_v22 }
  0x9c   : > { %643 = vst.msk [vmem:[#allocation2] sm:$0xff] %vm264_vm0, %v611_v25  ;;  %v308_v25 = vld [vmem:[#allocation2 + $0x58] sm:$0xff] }
  0x9d   : > { %651 = vst.msk [vmem:[#allocation2 + $0x40] sm:$0xff] %vm264_vm0, %v619_v26 }
  0xa0   : > { %v571_v32 = vpop.f32.mrf.mxu2  ;;  %v591_v33 = vpop.f32.mrf.mxu3 }
  0xa1   : > { %v627_v34 = vadd.f32 %v571_v32, %v313_v27  ;;  %v635_v35 = vadd.f32 %v591_v33, %v321_v28  ;;  %v533_v36 = vpop.f32.mrf.mxu0  ;;  %v553_v37 = vpop.f32.mrf.mxu1 }
  0xa2   : > { %v612_v38 = vadd.f32 %v533_v36, %v298_v29  ;;  %v620_v39 = vadd.f32 %v553_v37, %v306_v30  ;;  %v316_v36 = vld [vmem:[#allocation2 + $0x98] sm:$0xff] }
  0xa3   : > { %v678_v40 = vld [vmem:[#allocation2] sm:$0xff]  ;;  %659 = vst.msk [vmem:[#allocation2 + $0x80] sm:$0xff] %vm264_vm0, %v627_v34 }
  0xa4   : > { %v714_v41 = vadd.f32 %v1339_v31, %v678_v40  ;;  %v686_v42 = vld [vmem:[#allocation2 + $0x40] sm:$0xff]  ;;  %667 = vst.msk [vmem:[#allocation2 + $0xc0] sm:$0xff] %vm264_vm0, %v635_v35 }
  0xa5   : > { %v722_v43 = vadd.f32 %v1339_v31, %v686_v42  ;;  %644 = vst.msk [vmem:[#allocation2 + $0x8] sm:$0xff] %vm264_vm0, %v612_v38 }
  0xa6   : > { %vm746_vm1 = vcmp.gt.f32.partialorder %v714_v41, 0.0  ;;  %v778_v44 = vmul.f32 0.2, %v714_v41  ;;  %652 = vst.msk [vmem:[#allocation2 + $0x48] sm:$0xff] %vm264_vm0, %v620_v39 }
  0xa7   : > { %vm754_vm2 = vcmp.gt.f32.partialorder %v722_v43, 0.0  ;;  %v786_v46 = vmul.f32 0.2, %v722_v43 }
  0xa8   : > { %v810_v48 = vsel %vm746_vm1, %v714_v41, %v778_v44  ;;  %v573_v49 = vpop.f32.mrf.mxu2  ;;  %v593_v50 = vpop.f32.mrf.mxu3 }
  0xa9   : > { %v842_v52 = vpack.c.bf16 %v810_v48, %v810_v48  ;;  %v818_v53 = vsel %vm754_vm2, %v722_v43, %v786_v46  ;;  %v628_v54 = vadd.f32 %v573_v49, %v314_v45  ;;  %v536_v55 = vpop.f32.mrf.mxu0  ;;  %v556_v57 = vpop.f32.mrf.mxu1  ;;  %v636_v60 = vadd.f32 %v593_v50, %v322_v47  ;;  %v324_v47 = vld [vmem:[#allocation2 + $0xd8] sm:$0xff] }
  0xaa   : > { %v850_v58 = vpack.c.bf16 %v818_v53, %v818_v53  ;;  %v694_v59 = vld [vmem:[#allocation2 + $0x80] sm:$0xff]  ;;  %v613_v63 = vadd.f32 %v536_v55, %v299_v51  ;;  %v621_v2 = vadd.f32 %v556_v57, %v307_v56 }
  0xab   : > { %875 = vst.msk [vmem:[%s1352_s6] sm:$0xf] %vm874_vm3, %v842_v52  ;;  %v730_v61 = vadd.f32 %v1339_v31, %v694_v59  ;;  %v702_v62 = vld [vmem:[#allocation2 + $0xc0] sm:$0xff] }
  0xac   : > { %883 = vst.msk [vmem:[%s1352_s6 + $0x20] sm:$0xf] %vm874_vm3, %v850_v58  ;;  %v738_v0 = vadd.f32 %v1339_v31, %v702_v62  ;;  %v679_v1 = vld [vmem:[#allocation2 + $0x8] sm:$0xff]  ;;  %v301_v53 = vld [vmem:[#allocation2 + $0x20] sm:$0xff] }
  0xad   : > { %vm762_vm4 = vcmp.gt.f32.partialorder %v730_v61, 0.0  ;;  %v794_v3 = vmul.f32 0.2, %v730_v61  ;;  %v715_v4 = vadd.f32 %v1339_v31, %v679_v1  ;;  %v687_v5 = vld [vmem:[#allocation2 + $0x48] sm:$0xff]  ;;  %660 = vst.msk [vmem:[#allocation2 + $0x88] sm:$0xff] %vm264_vm0, %v628_v54  ;;  %v309_v56 = vld [vmem:[#allocation2 + $0x60] sm:$0xff] }
  0xae   : > { %vm770_vm5 = vcmp.gt.f32.partialorder %v738_v0, 0.0  ;;  %v802_v6 = vmul.f32 0.2, %v738_v0  ;;  %v723_v7 = vadd.f32 %v1339_v31, %v687_v5  ;;  %668 = vst.msk [vmem:[#allocation2 + $0xc8] sm:$0xff] %vm264_vm0, %v636_v60  ;;  %v325_v5 = vld [vmem:[#allocation2 + $0xe0] sm:$0xff] }
  0xaf   : > { %v826_v8 = vsel %vm762_vm4, %v730_v61, %v794_v3  ;;  %vm747_vm6 = vcmp.gt.f32.partialorder %v715_v4, 0.0  ;;  %v779_v9 = vmul.f32 0.2, %v715_v4  ;;  %645 = vst.msk [vmem:[#allocation2 + $0x10] sm:$0xff] %vm264_vm0, %v613_v63 }
  0xb0   : > { %v858_v11 = vpack.c.bf16 %v826_v8, %v826_v8  ;;  %v834_v12 = vsel %vm770_vm5, %v738_v0, %v802_v6  ;;  %vm755_vm7 = vcmp.gt.f32.partialorder %v723_v7, 0.0  ;;  %v787_v13 = vmul.f32 0.2, %v723_v7  ;;  %653 = vst.msk [vmem:[#allocation2 + $0x50] sm:$0xff] %vm264_vm0, %v621_v2  ;;  %v576_v14 = vpop.f32.mrf.mxu2  ;;  %v596_v16 = vpop.f32.mrf.mxu3  ;;  %v317_v2 = vld [vmem:[#allocation2 + $0xa0] sm:$0xff] }
  0xb1   : > { %v866_v17 = vpack.c.bf16 %v834_v12, %v834_v12  ;;  %v811_v18 = vsel %vm747_vm6, %v715_v4, %v779_v9  ;;  %v538_v20 = vpop.f32.mrf.mxu0  ;;  %v558_v21 = vpop.f32.mrf.mxu1  ;;  %v629_v24 = vadd.f32 %v576_v14, %v315_v10  ;;  %v637_v27 = vadd.f32 %v596_v16, %v323_v15 }
  0xb2   : > { %891 = vst.msk [vmem:[%s1352_s6 + $0x40] sm:$0xf] %vm874_vm3, %v858_v11  ;;  %v843_v22 = vpack.c.bf16 %v811_v18, %v811_v18  ;;  %v819_v23 = vsel %vm755_vm7, %v723_v7, %v787_v13  ;;  %v614_v29 = vadd.f32 %v538_v20, %v300_v19  ;;  %v622_v33 = vadd.f32 %v558_v21, %v308_v25  ;;  %v302_v20 = vld [vmem:[#allocation2 + $0x28] sm:$0xff] }
  0xb3   : > { %899 = vst.msk [vmem:[%s1352_s6 + $0x60] sm:$0xf] %vm874_vm3, %v866_v17  ;;  %v851_v26 = vpack.c.bf16 %v819_v23, %v819_v23 }
  0xb4   : > { %876 = vst.msk [vmem:[%s1352_s6 + $0x4] sm:$0xf] %vm874_vm3, %v843_v22  ;;  %v695_v28 = vld [vmem:[#allocation2 + $0x88] sm:$0xff] }
  0xb5   : > { %884 = vst.msk [vmem:[%s1352_s6 + $0x24] sm:$0xf] %vm874_vm3, %v851_v26  ;;  %v731_v30 = vadd.f32 %v1339_v31, %v695_v28  ;;  %v703_v32 = vld [vmem:[#allocation2 + $0xc8] sm:$0xff] }
  0xb6   : > { %v739_v34 = vadd.f32 %v1339_v31, %v703_v32  ;;  %v680_v35 = vld [vmem:[#allocation2 + $0x10] sm:$0xff]  ;;  %661 = vst.msk [vmem:[#allocation2 + $0x90] sm:$0xff] %vm264_vm0, %v629_v24  ;;  %v310_v24 = vld [vmem:[#allocation2 + $0x68] sm:$0xff] }
  0xb7   : > { %vm763_vm8 = vcmp.gt.f32.partialorder %v731_v30, 0.0  ;;  %v795_v37 = vmul.f32 0.2, %v731_v30  ;;  %v716_v38 = vadd.f32 %v1339_v31, %v680_v35  ;;  %v688_v39 = vld [vmem:[#allocation2 + $0x50] sm:$0xff]  ;;  %669 = vst.msk [vmem:[#allocation2 + $0xd0] sm:$0xff] %vm264_vm0, %v637_v27  ;;  %v318_v32 = vld [vmem:[#allocation2 + $0xa8] sm:$0xff] }
  0xb8   : > { %vm771_vm9 = vcmp.gt.f32.partialorder %v739_v34, 0.0  ;;  %v803_v40 = vmul.f32 0.2, %v739_v34  ;;  %v724_v41 = vadd.f32 %v1339_v31, %v688_v39  ;;  %646 = vst.msk [vmem:[#allocation2 + $0x18] sm:$0xff] %vm264_vm0, %v614_v29  ;;  %v578_v42 = vpop.f32.mrf.mxu2  ;;  %v598_v43 = vpop.f32.mrf.mxu3 }
  0xb9   : > { %v827_v44 = vsel %vm763_vm8, %v731_v30, %v795_v37  ;;  %vm748_vm10 = vcmp.gt.f32.partialorder %v716_v38, 0.0  ;;  %v780_v45 = vmul.f32 0.2, %v716_v38  ;;  %654 = vst.msk [vmem:[#allocation2 + $0x58] sm:$0xff] %vm264_vm0, %v622_v33  ;;  %v630_v46 = vadd.f32 %v578_v42, %v316_v36  ;;  %v541_v48 = vpop.f32.mrf.mxu0  ;;  %v561_v49 = vpop.f32.mrf.mxu1  ;;  %v326_v36 = vld [vmem:[#allocation2 + $0xe8] sm:$0xff] }
  0xba   : > { %v859_v50 = vpack.c.bf16 %v827_v44, %v827_v44  ;;  %v835_v51 = vsel %vm771_vm9, %v739_v34, %v803_v40  ;;  %vm756_vm11 = vcmp.gt.f32.partialorder %v724_v41, 0.0  ;;  %v788_v52 = vmul.f32 0.2, %v724_v41 }
  0xbb   : > { %v867_v54 = vpack.c.bf16 %v835_v51, %v835_v51  ;;  %v812_v55 = vsel %vm748_vm10, %v716_v38, %v780_v45  ;;  %662 = vst.msk [vmem:[#allocation2 + $0x98] sm:$0xff] %vm264_vm0, %v630_v46  ;;  %v638_v59 = vadd.f32 %v598_v43, %v324_v47  ;;  %v615_v62 = vadd.f32 %v541_v48, %v301_v53  ;;  %v303_v38 = vld [vmem:[#allocation2 + $0x30] sm:$0xff] }
  0xbc   : > { %892 = vst.msk [vmem:[%s1352_s6 + $0x44] sm:$0xf] %vm874_vm3, %v859_v50  ;;  %v844_v57 = vpack.c.bf16 %v812_v55, %v812_v55  ;;  %v820_v58 = vsel %vm756_vm11, %v724_v41, %v788_v52  ;;  %v623_v1 = vadd.f32 %v561_v49, %v309_v56 }
  0xbd   : > { %900 = vst.msk [vmem:[%s1352_s6 + $0x64] sm:$0xf] %vm874_vm3, %v867_v54  ;;  %v852_v60 = vpack.c.bf16 %v820_v58, %v820_v58  ;;  %v696_v61 = vld [vmem:[#allocation2 + $0x90] sm:$0xff] }
  0xbe   : > { %877 = vst.msk [vmem:[%s1352_s6 + $0x8] sm:$0xf] %vm874_vm3, %v844_v57  ;;  %v732_v63 = vadd.f32 %v1339_v31, %v696_v61  ;;  %v704_v0 = vld [vmem:[#allocation2 + $0xd0] sm:$0xff] }
  0xbf   : > { %885 = vst.msk [vmem:[%s1352_s6 + $0x28] sm:$0xf] %vm874_vm3, %v852_v60  ;;  %v740_v3 = vadd.f32 %v1339_v31, %v704_v0  ;;  %v681_v4 = vld [vmem:[#allocation2 + $0x18] sm:$0xff]  ;;  %v311_v0 = vld [vmem:[#allocation2 + $0x70] sm:$0xff] }
  0xc0   : > { %vm764_vm12 = vcmp.gt.f32.partialorder %v732_v63, 0.0  ;;  %v796_v6 = vmul.f32 0.2, %v732_v63  ;;  %v717_v7 = vadd.f32 %v1339_v31, %v681_v4  ;;  %v689_v8 = vld [vmem:[#allocation2 + $0x58] sm:$0xff]  ;;  %670 = vst.msk [vmem:[#allocation2 + $0xd8] sm:$0xff] %vm264_vm0, %v638_v59  ;;  %v581_v9 = vpop.f32.mrf.mxu2  ;;  %v601_v10 = vpop.f32.mrf.mxu3  ;;  %v319_v4 = vld [vmem:[#allocation2 + $0xb0] sm:$0xff] }
  0xc1   : > { %vm772_vm13 = vcmp.gt.f32.partialorder %v740_v3, 0.0  ;;  %v804_v11 = vmul.f32 0.2, %v740_v3  ;;  %v725_v12 = vadd.f32 %v1339_v31, %v689_v8  ;;  %647 = vst.msk [vmem:[#allocation2 + $0x20] sm:$0xff] %vm264_vm0, %v615_v62  ;;  %v631_v13 = vadd.f32 %v581_v9, %v317_v2  ;;  %v543_v14 = vpop.f32.mrf.mxu0  ;;  %v563_v15 = vpop.f32.mrf.mxu1 }
  0xc2   : > { %v828_v16 = vsel %vm764_vm12, %v732_v63, %v796_v6  ;;  %vm749_vm14 = vcmp.gt.f32.partialorder %v717_v7, 0.0  ;;  %v781_v17 = vmul.f32 0.2, %v717_v7  ;;  %v697_v18 = vld [vmem:[#allocation2 + $0x98] sm:$0xff]  ;;  %655 = vst.msk [vmem:[#allocation2 + $0x60] sm:$0xff] %vm264_vm0, %v623_v1  ;;  %v639_v19 = vadd.f32 %v601_v10, %v325_v5 }
  0xc3   : > { %v860_v21 = vpack.c.bf16 %v828_v16, %v828_v16  ;;  %v836_v22 = vsel %vm772_vm13, %v740_v3, %v804_v11  ;;  %vm757_vm15 = vcmp.gt.f32.partialorder %v725_v12, 0.0  ;;  %v789_v23 = vmul.f32 0.2, %v725_v12  ;;  %663 = vst.msk [vmem:[#allocation2 + $0xa0] sm:$0xff] %vm264_vm0, %v631_v13 }
  0xc4   : > { %v868_v25 = vpack.c.bf16 %v836_v22, %v836_v22  ;;  %v813_v26 = vsel %vm749_vm14, %v717_v7, %v781_v17  ;;  %v733_v27 = vadd.f32 %v1339_v31, %v697_v18  ;;  %671 = vst.msk [vmem:[#allocation2 + $0xe0] sm:$0xff] %vm264_vm0, %v639_v19  ;;  %v616_v30 = vadd.f32 %v543_v14, %v302_v20  ;;  %v327_v7 = vld [vmem:[#allocation2 + $0xf0] sm:$0xff]  ;;  %v304_v14 = vld [vmem:[#allocation2 + $0x38] sm:$0xff] }
  0xc5   : > { %893 = vst.msk [vmem:[%s1352_s6 + $0x48] sm:$0xf] %vm874_vm3, %v860_v21  ;;  %v845_v28 = vpack.c.bf16 %v813_v26, %v813_v26  ;;  %v821_v29 = vsel %vm757_vm15, %v725_v12, %v789_v23  ;;  %v624_v35 = vadd.f32 %v563_v15, %v310_v24  ;;  %v312_v22 = vld [vmem:[#allocation2 + $0x78] sm:$0xff] }
  0xc6   : > { %901 = vst.msk [vmem:[%s1352_s6 + $0x68] sm:$0xf] %vm874_vm3, %v868_v25  ;;  %v853_v33 = vpack.c.bf16 %v821_v29, %v821_v29  ;;  %vm765_vm1 = vcmp.gt.f32.partialorder %v733_v27, 0.0  ;;  %v797_v34 = vmul.f32 0.2, %v733_v27 }
  0xc7   : > { %878 = vst.msk [vmem:[%s1352_s6 + $0xc] sm:$0xf] %vm874_vm3, %v845_v28  ;;  %v705_v37 = vld [vmem:[#allocation2 + $0xd8] sm:$0xff] }
  0xc8   : > { %886 = vst.msk [vmem:[%s1352_s6 + $0x2c] sm:$0xf] %vm874_vm3, %v853_v33  ;;  %v829_v39 = vsel %vm765_vm1, %v733_v27, %v797_v34  ;;  %v741_v40 = vadd.f32 %v1339_v31, %v705_v37  ;;  %v682_v41 = vld [vmem:[#allocation2 + $0x20] sm:$0xff]  ;;  %v583_v42 = vpop.f32.mrf.mxu2  ;;  %v603_v43 = vpop.f32.mrf.mxu3 }
  0xc9   : > { %v861_v44 = vpack.c.bf16 %v829_v39, %v829_v39  ;;  %v718_v45 = vadd.f32 %v1339_v31, %v682_v41  ;;  %v690_v46 = vld [vmem:[#allocation2 + $0x60] sm:$0xff]  ;;  %648 = vst.msk [vmem:[#allocation2 + $0x28] sm:$0xff] %vm264_vm0, %v616_v30  ;;  %v632_v47 = vadd.f32 %v583_v42, %v318_v32  ;;  %v640_v48 = vadd.f32 %v603_v43, %v326_v36  ;;  %v546_v49 = vpop.f32.mrf.mxu0  ;;  %v566_v50 = vpop.f32.mrf.mxu1  ;;  %v320_v41 = vld [vmem:[#allocation2 + $0xb8] sm:$0xff] }
  0xca   : > { %vm773_vm2 = vcmp.gt.f32.partialorder %v741_v40, 0.0  ;;  %v805_v51 = vmul.f32 0.2, %v741_v40  ;;  %v726_v52 = vadd.f32 %v1339_v31, %v690_v46  ;;  %v698_v53 = vld [vmem:[#allocation2 + $0xa0] sm:$0xff]  ;;  %656 = vst.msk [vmem:[#allocation2 + $0x68] sm:$0xff] %vm264_vm0, %v624_v35  ;;  %v617_v54 = vadd.f32 %v546_v49, %v303_v38 }
  0xcb   : > { %894 = vst.msk [vmem:[%s1352_s6 + $0x4c] sm:$0xf] %vm874_vm3, %v861_v44  ;;  %vm750_vm4 = vcmp.gt.f32.partialorder %v718_v45, 0.0  ;;  %v782_v55 = vmul.f32 0.2, %v718_v45  ;;  %v734_v56 = vadd.f32 %v1339_v31, %v698_v53  ;;  %v706_v57 = vld [vmem:[#allocation2 + $0xe0] sm:$0xff]  ;;  %v625_v11 = vadd.f32 %v566_v50, %v311_v0 }
  0xcc   : > { %v837_v58 = vsel %vm773_vm2, %v741_v40, %v805_v51  ;;  %vm758_vm5 = vcmp.gt.f32.partialorder %v726_v52, 0.0  ;;  %v790_v59 = vmul.f32 0.2, %v726_v52  ;;  %v742_v60 = vadd.f32 %v1339_v31, %v706_v57  ;;  %664 = vst.msk [vmem:[#allocation2 + $0xa8] sm:$0xff] %vm264_vm0, %v632_v47  ;;  %v328_v44 = vld [vmem:[#allocation2 + $0xf8] sm:$0xff] }
  0xcd   : > { %v869_v61 = vpack.c.bf16 %v837_v58, %v837_v58  ;;  %v814_v62 = vsel %vm750_vm4, %v718_v45, %v782_v55  ;;  %vm766_vm6 = vcmp.gt.f32.partialorder %v734_v56, 0.0  ;;  %v798_v63 = vmul.f32 0.2, %v734_v56  ;;  %672 = vst.msk [vmem:[#allocation2 + $0xe8] sm:$0xff] %vm264_vm0, %v640_v48 }
  0xce   : > { %v846_v1 = vpack.c.bf16 %v814_v62, %v814_v62  ;;  %v822_v2 = vsel %vm758_vm5, %v726_v52, %v790_v59  ;;  %vm774_vm7 = vcmp.gt.f32.partialorder %v742_v60, 0.0  ;;  %v806_v3 = vmul.f32 0.2, %v742_v60  ;;  %649 = vst.msk [vmem:[#allocation2 + $0x30] sm:$0xff] %vm264_vm0, %v617_v54 }
  0xcf   : > { %902 = vst.msk [vmem:[%s1352_s6 + $0x6c] sm:$0xf] %vm874_vm3, %v869_v61  ;;  %v854_v5 = vpack.c.bf16 %v822_v2, %v822_v2  ;;  %v830_v6 = vsel %vm766_vm6, %v734_v56, %v798_v63 }
  0xd0   : > { %879 = vst.msk [vmem:[%s1352_s6 + $0x10] sm:$0xf] %vm874_vm3, %v846_v1  ;;  %v862_v8 = vpack.c.bf16 %v830_v6, %v830_v6  ;;  %v838_v9 = vsel %vm774_vm7, %v742_v60, %v806_v3  ;;  %v683_v10 = vld [vmem:[#allocation2 + $0x28] sm:$0xff]  ;;  %v586_v12 = vpop.f32.mrf.mxu2  ;;  %v606_v13 = vpop.f32.mrf.mxu3 }
  0xd1   : > { %887 = vst.msk [vmem:[%s1352_s6 + $0x30] sm:$0xf] %vm874_vm3, %v854_v5  ;;  %v870_v15 = vpack.c.bf16 %v838_v9, %v838_v9  ;;  %v719_v16 = vadd.f32 %v1339_v31, %v683_v10  ;;  %v691_v17 = vld [vmem:[#allocation2 + $0x68] sm:$0xff]  ;;  %v633_v18 = vadd.f32 %v586_v12, %v319_v4  ;;  %v548_v19 = vpop.f32.mrf.mxu0  ;;  %v641_v21 = vadd.f32 %v606_v13, %v327_v7  ;;  %v568_v23 = vpop.f32.mrf.mxu1 }
  0xd2   : > { %895 = vst.msk [vmem:[%s1352_s6 + $0x50] sm:$0xf] %vm874_vm3, %v862_v8  ;;  %v727_v20 = vadd.f32 %v1339_v31, %v691_v17  ;;  %v618_v26 = vadd.f32 %v548_v19, %v304_v14  ;;  %v626_v34 = vadd.f32 %v568_v23, %v312_v22 }
  0xd3   : > { %903 = vst.msk [vmem:[%s1352_s6 + $0x70] sm:$0xf] %vm874_vm3, %v870_v15  ;;  %vm751_vm8 = vcmp.gt.f32.partialorder %v719_v16, 0.0  ;;  %v783_v24 = vmul.f32 0.2, %v719_v16  ;;  %v699_v25 = vld [vmem:[#allocation2 + $0xa8] sm:$0xff] }
  0xd4   : > { %vm759_vm9 = vcmp.gt.f32.partialorder %v727_v20, 0.0  ;;  %v791_v27 = vmul.f32 0.2, %v727_v20  ;;  %v735_v28 = vadd.f32 %v1339_v31, %v699_v25  ;;  %v707_v29 = vld [vmem:[#allocation2 + $0xe8] sm:$0xff]  ;;  %657 = vst.msk [vmem:[#allocation2 + $0x70] sm:$0xff] %vm264_vm0, %v625_v11 }
  0xd5   : > { %v815_v30 = vsel %vm751_vm8, %v719_v16, %v783_v24  ;;  %v743_v32 = vadd.f32 %v1339_v31, %v707_v29  ;;  %v684_v33 = vld [vmem:[#allocation2 + $0x30] sm:$0xff]  ;;  %665 = vst.msk [vmem:[#allocation2 + $0xb0] sm:$0xff] %vm264_vm0, %v633_v18 }
  0xd6   : > { %v847_v35 = vpack.c.bf16 %v815_v30, %v815_v30  ;;  %v823_v36 = vsel %vm759_vm9, %v727_v20, %v791_v27  ;;  %vm767_vm10 = vcmp.gt.f32.partialorder %v735_v28, 0.0  ;;  %v799_v37 = vmul.f32 0.2, %v735_v28  ;;  %673 = vst.msk [vmem:[#allocation2 + $0xf0] sm:$0xff] %vm264_vm0, %v641_v21 }
  0xd7   : > { %v855_v38 = vpack.c.bf16 %v823_v36, %v823_v36  ;;  %vm775_vm11 = vcmp.gt.f32.partialorder %v743_v32, 0.0  ;;  %v807_v39 = vmul.f32 0.2, %v743_v32  ;;  %v720_v40 = vadd.f32 %v1339_v31, %v684_v33  ;;  %650 = vst.msk [vmem:[#allocation2 + $0x38] sm:$0xff] %vm264_vm0, %v618_v26 }
  0xd8   : > { %880 = vst.msk [vmem:[%s1352_s6 + $0x14] sm:$0xf] %vm874_vm3, %v847_v35  ;;  %v831_v42 = vsel %vm767_vm10, %v735_v28, %v799_v37  ;;  %v588_v43 = vpop.f32.mrf.mxu2  ;;  %v608_v45 = vpop.f32.mrf.mxu3 }
  0xd9   : > { %888 = vst.msk [vmem:[%s1352_s6 + $0x34] sm:$0xf] %vm874_vm3, %v855_v38  ;;  %v863_v46 = vpack.c.bf16 %v831_v42, %v831_v42  ;;  %v839_v47 = vsel %vm775_vm11, %v743_v32, %v807_v39  ;;  %vm752_vm12 = vcmp.gt.f32.partialorder %v720_v40, 0.0  ;;  %v784_v48 = vmul.f32 0.2, %v720_v40 }
  0xda   : > { %v871_v49 = vpack.c.bf16 %v839_v47, %v839_v47  ;;  %658 = vst.msk [vmem:[#allocation2 + $0x78] sm:$0xff] %vm264_vm0, %v626_v34  ;;  %v634_v50 = vadd.f32 %v588_v43, %v320_v41  ;;  %v642_v53 = vadd.f32 %v608_v45, %v328_v44 }
  0xdb   : > { %896 = vst.msk [vmem:[%s1352_s6 + $0x54] sm:$0xf] %vm874_vm3, %v863_v46  ;;  %v816_v51 = vsel %vm752_vm12, %v720_v40, %v784_v48  ;;  %v692_v52 = vld [vmem:[#allocation2 + $0x70] sm:$0xff] }
  0xdc   : > { %904 = vst.msk [vmem:[%s1352_s6 + $0x74] sm:$0xf] %vm874_vm3, %v871_v49  ;;  %v848_v54 = vpack.c.bf16 %v816_v51, %v816_v51  ;;  %v728_v55 = vadd.f32 %v1339_v31, %v692_v52  ;;  %v700_v56 = vld [vmem:[#allocation2 + $0xb0] sm:$0xff] }
  0xdd   : > { %v736_v57 = vadd.f32 %v1339_v31, %v700_v56  ;;  %v708_v58 = vld [vmem:[#allocation2 + $0xf0] sm:$0xff]  ;;  %666 = vst.msk [vmem:[#allocation2 + $0xb8] sm:$0xff] %vm264_vm0, %v634_v50 }
  0xde   : > { %881 = vst.msk [vmem:[%s1352_s6 + $0x18] sm:$0xf] %vm874_vm3, %v848_v54  ;;  %vm760_vm13 = vcmp.gt.f32.partialorder %v728_v55, 0.0  ;;  %v792_v59 = vmul.f32 0.2, %v728_v55  ;;  %v744_v60 = vadd.f32 %v1339_v31, %v708_v58  ;;  %v685_v61 = vld [vmem:[#allocation2 + $0x38] sm:$0xff] }
  0xdf   : > { %vm768_vm14 = vcmp.gt.f32.partialorder %v736_v57, 0.0  ;;  %v800_v62 = vmul.f32 0.2, %v736_v57  ;;  %v721_v63 = vadd.f32 %v1339_v31, %v685_v61  ;;  %674 = vst.msk [vmem:[#allocation2 + $0xf8] sm:$0xff] %vm264_vm0, %v642_v53 }
  0xe0   : > { %v824_v0 = vsel %vm760_vm13, %v728_v55, %v792_v59  ;;  %vm776_vm15 = vcmp.gt.f32.partialorder %v744_v60, 0.0  ;;  %v808_v1 = vmul.f32 0.2, %v744_v60 }
  0xe1   : > { %v856_v2 = vpack.c.bf16 %v824_v0, %v824_v0  ;;  %v832_v3 = vsel %vm768_vm14, %v736_v57, %v800_v62  ;;  %vm753_vm1 = vcmp.gt.f32.partialorder %v721_v63, 0.0  ;;  %v785_v4 = vmul.f32 0.2, %v721_v63  ;;  %v693_v5 = vld [vmem:[#allocation2 + $0x78] sm:$0xff] }
  0xe2   : > { %v864_v6 = vpack.c.bf16 %v832_v3, %v832_v3  ;;  %v840_v7 = vsel %vm776_vm15, %v744_v60, %v808_v1  ;;  %v729_v8 = vadd.f32 %v1339_v31, %v693_v5 }
  0xe3   : > { %889 = vst.msk [vmem:[%s1352_s6 + $0x38] sm:$0xf] %vm874_vm3, %v856_v2  ;;  %v872_v9 = vpack.c.bf16 %v840_v7, %v840_v7  ;;  %v817_v10 = vsel %vm753_vm1, %v721_v63, %v785_v4 }
  0xe4   : > { %897 = vst.msk [vmem:[%s1352_s6 + $0x58] sm:$0xf] %vm874_vm3, %v864_v6  ;;  %v849_v11 = vpack.c.bf16 %v817_v10, %v817_v10  ;;  %vm761_vm0 = vcmp.gt.f32.partialorder %v729_v8, 0.0  ;;  %v793_v12 = vmul.f32 0.2, %v729_v8  ;;  %v701_v13 = vld [vmem:[#allocation2 + $0xb8] sm:$0xff] }
  0xe5   : > { %905 = vst.msk [vmem:[%s1352_s6 + $0x78] sm:$0xf] %vm874_vm3, %v872_v9  ;;  %v737_v14 = vadd.f32 %v1339_v31, %v701_v13 }
  0xe6   : > { %882 = vst.msk [vmem:[%s1352_s6 + $0x1c] sm:$0xf] %vm874_vm3, %v849_v11  ;;  %v825_v15 = vsel %vm761_vm0, %v729_v8, %v793_v12  ;;  %v709_v16 = vld [vmem:[#allocation2 + $0xf8] sm:$0xff] }
  0xe7   : > { %v857_v17 = vpack.c.bf16 %v825_v15, %v825_v15  ;;  %vm769_vm2 = vcmp.gt.f32.partialorder %v737_v14, 0.0  ;;  %v801_v18 = vmul.f32 0.2, %v737_v14  ;;  %v745_v19 = vadd.f32 %v1339_v31, %v709_v16 }
  0xe9   : > { %890 = vst.msk [vmem:[%s1352_s6 + $0x3c] sm:$0xf] %vm874_vm3, %v857_v17  ;;  %v833_v20 = vsel %vm769_vm2, %v737_v14, %v801_v18  ;;  %vm777_vm4 = vcmp.gt.f32.partialorder %v745_v19, 0.0  ;;  %v809_v21 = vmul.f32 0.2, %v745_v19 }
  0xea   : > { %v865_v22 = vpack.c.bf16 %v833_v20, %v833_v20 }
  0xeb   : > { %v841_v23 = vsel %vm777_vm4, %v745_v19, %v809_v21 }
  0xec   : > { %898 = vst.msk [vmem:[%s1352_s6 + $0x5c] sm:$0xf] %vm874_vm3, %v865_v22  ;;  %v873_v24 = vpack.c.bf16 %v841_v23, %v841_v23 }
  0xee   : > { %906 = vst.msk [vmem:[%s1352_s6 + $0x7c] sm:$0xf] %vm874_vm3, %v873_v24 }
  0xef PF: > { %s13_s14 = sadd.s32 1, %s1207_s14   ;;  %s1487_s12 = smov %s1203_s13 }
  0xf0   : > { %p10_p5 = scmp.ge.s32.totalorder %s13_s14, 4   ;;  %s1488_s13 = smov %s1490_s15 }
  0xf2   :  { %12 = sbr.rel (!%p10_p5) target bundleno = 2 (0x2), region = 76 }

// kernel: discriminator_forward.4
= control target key start
LH: loop header
LB: loop body
LE: loop exit
PB: predicated region body
PF: predicated region fallthrough
CT: control target
= control target key end

     0   :  { %s1766_s12 = smov 0   ;;  %s1768_s13 = smov 0   ;;  %s2047_s0 = inlined_call_operand.vmem [shape: bf16[128,1024], index: 0, kind: input, shape index: {}]   ;;  %s2048_s1 = inlined_call_operand.vmem [shape: bf16[1024,128], index: 1, kind: input, shape index: {}]   ;;  %s2049_s2 = inlined_call_operand.vmem [shape: f32[1,128], index: 2, kind: input, shape index: {}]   ;;  %s2050_s3 = inlined_call_operand.vmem [shape: bf16[128,128], index: 3, kind: output, shape index: {}]  }
   0x1   :  { %s1770_s14 = smov 0   ;;  %s1772_s15 = smov 0  }
   0x2   :  { %s1774_s16 = smov 0  }
   0x3 LB: > { %s25_s17 = sadd.s32 1, %s1739_s15  ;;  %p48_p1 = scmp.ne.s32.totalorder %s1731_s13, %s1727_s12  ;;  %s1743_s16 = sphi %s1774_s16, %s13_s16   ;;  %s1739_s15 = sphi %s1772_s15, %s2054_s15   ;;  %s1735_s14 = sphi %s1770_s14, %s2053_s14   ;;  %s1731_s13 = sphi %s1768_s13, %s2052_s13   ;;  %s1727_s12 = sphi %s1766_s12, %s2051_s12  }
   0x4   : > { %p26_p0 = scmp.ge.s32.totalorder %s25_s17, 2  ;;  %p49_p2 = scmp.eq.s32.totalorder %s1743_s16, 0 }
   0x5   : > { %s41_s19 = sadd.s32 1, %s1731_s13  ;;  %p1281_p5 = scmp.ge.s32.totalorder %s1743_s16, 2 }
   0x6   : > { %s2056_s17 = smov (%p26_p0, %s25_s17), 0  ;;  %p50_p3 = por %p49_p2, %p48_p1 }
   0x7   : > { %s37_s18 = ssub.s32 %s1739_s15, %s2056_s17  ;;  %162 = sbr.rel (%p1281_p5) target bundleno = 48 (0x30), region = 20 }
   0x8   : > { %p39_p4 = scmp.eq.s32.totalorder %s37_s18, 0 }
   0xa   : > { %s1801_s20 = scalar_select %p39_p4, %s1731_s13, %s41_s19  }
   0xc   : > { %165 = sbr.rel (!%p50_p3) target bundleno = 48 (0x30), region = 24  ;;  %s167_s21 = sand.u32 (%p50_p3), 1, %s1731_s13  }
   0xd   : > { %s1551_s22 = sshll.u32 (%p50_p3), %s1739_s15, 4  ;;  %s1282_s23 = sshll.u32 (%p50_p3), %s167_s21, 8 }
   0xe   : > { %s1809_s26 = scalar_lea.vmem (%p50_p3), %s2047_s0, %s1551_s22  ;;  %s1814_s27 = scalar_lea.vmem (%p50_p3), [#allocation3], %s1282_s23 }
   0xf   : > { %v188_v0 = vld [vmem:[%s1809_s26] sm:$0xff] (%p50_p3)  ;;  %v190_v1 = vld [vmem:[%s1809_s26 + $0x8] sm:$0xff] (%p50_p3) }
  0x10   : > { %v192_v2 = vld [vmem:[%s1809_s26 + $0x20] sm:$0xff] (%p50_p3)  ;;  %189 = vst [vmem:[%s1814_s27] sm:$0xff] (%p50_p3), %v188_v0  ;;  %v194_v3 = vld [vmem:[%s1809_s26 + $0x28] sm:$0xff] (%p50_p3) }
  0x11   : > { %191 = vst [vmem:[%s1814_s27 + $0x8] sm:$0xff] %v190_v1  ;;  %v196_v4 = vld [vmem:[%s1809_s26 + $0x40] sm:$0xff]  ;;  %v198_v5 = vld [vmem:[%s1809_s26 + $0x48] sm:$0xff] }
  0x12   : > { %193 = vst [vmem:[%s1814_s27 + $0x10] sm:$0xff] %v192_v2  ;;  %v200_v6 = vld [vmem:[%s1809_s26 + $0x60] sm:$0xff]  ;;  %v202_v7 = vld [vmem:[%s1809_s26 + $0x68] sm:$0xff] }
  0x13   : > { %195 = vst [vmem:[%s1814_s27 + $0x18] sm:$0xff] %v194_v3  ;;  %v204_v8 = vld [vmem:[%s1809_s26 + $0x80] sm:$0xff]  ;;  %v206_v9 = vld [vmem:[%s1809_s26 + $0x88] sm:$0xff] }
  0x14   : > { %197 = vst [vmem:[%s1814_s27 + $0x20] sm:$0xff] %v196_v4  ;;  %v208_v10 = vld [vmem:[%s1809_s26 + $0xa0] sm:$0xff]  ;;  %v210_v11 = vld [vmem:[%s1809_s26 + $0xa8] sm:$0xff] }
  0x15   : > { %199 = vst [vmem:[%s1814_s27 + $0x28] sm:$0xff] %v198_v5  ;;  %v212_v12 = vld [vmem:[%s1809_s26 + $0xc0] sm:$0xff]  ;;  %v214_v13 = vld [vmem:[%s1809_s26 + $0xc8] sm:$0xff] }
  0x16   : > { %201 = vst [vmem:[%s1814_s27 + $0x30] sm:$0xff] %v200_v6  ;;  %v216_v14 = vld [vmem:[%s1809_s26 + $0xe0] sm:$0xff]  ;;  %v218_v15 = vld [vmem:[%s1809_s26 + $0xe8] sm:$0xff] }
  0x17   : > { %203 = vst [vmem:[%s1814_s27 + $0x38] sm:$0xff] %v202_v7  ;;  %v220_v16 = vld [vmem:[%s1809_s26 + $0x100] sm:$0xff]  ;;  %v222_v17 = vld [vmem:[%s1809_s26 + $0x108] sm:$0xff] }
  0x18   : > { %205 = vst [vmem:[%s1814_s27 + $0x40] sm:$0xff] %v204_v8  ;;  %v224_v18 = vld [vmem:[%s1809_s26 + $0x120] sm:$0xff]  ;;  %v226_v19 = vld [vmem:[%s1809_s26 + $0x128] sm:$0xff] }
  0x19   : > { %207 = vst [vmem:[%s1814_s27 + $0x48] sm:$0xff] %v206_v9  ;;  %v228_v20 = vld [vmem:[%s1809_s26 + $0x140] sm:$0xff]  ;;  %v230_v21 = vld [vmem:[%s1809_s26 + $0x148] sm:$0xff] }
  0x1a   : > { %209 = vst [vmem:[%s1814_s27 + $0x50] sm:$0xff] %v208_v10  ;;  %v232_v22 = vld [vmem:[%s1809_s26 + $0x160] sm:$0xff]  ;;  %v234_v23 = vld [vmem:[%s1809_s26 + $0x168] sm:$0xff] }
  0x1b   : > { %211 = vst [vmem:[%s1814_s27 + $0x58] sm:$0xff] %v210_v11  ;;  %v236_v24 = vld [vmem:[%s1809_s26 + $0x180] sm:$0xff]  ;;  %v238_v25 = vld [vmem:[%s1809_s26 + $0x188] sm:$0xff] }
  0x1c   : > { %213 = vst [vmem:[%s1814_s27 + $0x60] sm:$0xff] %v212_v12  ;;  %v240_v26 = vld [vmem:[%s1809_s26 + $0x1a0] sm:$0xff]  ;;  %v242_v27 = vld [vmem:[%s1809_s26 + $0x1a8] sm:$0xff] }
  0x1d   : > { %215 = vst [vmem:[%s1814_s27 + $0x68] sm:$0xff] %v214_v13  ;;  %v244_v28 = vld [vmem:[%s1809_s26 + $0x1c0] sm:$0xff]  ;;  %v246_v29 = vld [vmem:[%s1809_s26 + $0x1c8] sm:$0xff] }
  0x1e   : > { %217 = vst [vmem:[%s1814_s27 + $0x70] sm:$0xff] %v216_v14  ;;  %v248_v30 = vld [vmem:[%s1809_s26 + $0x1e0] sm:$0xff]  ;;  %v250_v31 = vld [vmem:[%s1809_s26 + $0x1e8] sm:$0xff] }
  0x1f   : > { %219 = vst [vmem:[%s1814_s27 + $0x78] sm:$0xff] %v218_v15 }
  0x20   : > { %221 = vst [vmem:[%s1814_s27 + $0x80] sm:$0xff] %v220_v16 }
  0x21   : > { %223 = vst [vmem:[%s1814_s27 + $0x88] sm:$0xff] %v222_v17 }
  0x22   : > { %225 = vst [vmem:[%s1814_s27 + $0x90] sm:$0xff] %v224_v18 }
  0x23   : > { %227 = vst [vmem:[%s1814_s27 + $0x98] sm:$0xff] %v226_v19 }
  0x24   : > { %229 = vst [vmem:[%s1814_s27 + $0xa0] sm:$0xff] %v228_v20 }
  0x25   : > { %231 = vst [vmem:[%s1814_s27 + $0xa8] sm:$0xff] %v230_v21 }
  0x26   : > { %233 = vst [vmem:[%s1814_s27 + $0xb0] sm:$0xff] %v232_v22 }
  0x27   : > { %235 = vst [vmem:[%s1814_s27 + $0xb8] sm:$0xff] %v234_v23 }
  0x28   : > { %237 = vst [vmem:[%s1814_s27 + $0xc0] sm:$0xff] %v236_v24 }
  0x29   : > { %239 = vst [vmem:[%s1814_s27 + $0xc8] sm:$0xff] %v238_v25 }
  0x2a   : > { %241 = vst [vmem:[%s1814_s27 + $0xd0] sm:$0xff] %v240_v26 }
  0x2b   : > { %243 = vst [vmem:[%s1814_s27 + $0xd8] sm:$0xff] %v242_v27 }
  0x2c   : > { %245 = vst [vmem:[%s1814_s27 + $0xe0] sm:$0xff] %v244_v28 }
  0x2d   : > { %247 = vst [vmem:[%s1814_s27 + $0xe8] sm:$0xff] %v246_v29 }
  0x2e   : > { %249 = vst [vmem:[%s1814_s27 + $0xf0] sm:$0xff] %v248_v30 }
  0x2f   : > { %251 = vst [vmem:[%s1814_s27 + $0xf8] sm:$0xff] %v250_v31 }
  0x30 PF: > { %p1285_p6 = scmp.ge.s32.totalorder %s1743_s16, 1  ;;  %p268_p7 = scmp.lt.s32.totalorder %s1743_s16, 3 }
  0x32   : > { %p269_p8 = pnand %p1285_p6, %p268_p7 }
  0x33   : > { %s275_s28 = sand.u32 (!%p269_p8), 1, %s1727_s12   ;;  %s1287_s29 = sshll.u32 (!%p269_p8), %s1735_s14, 6 }
  0x34   : > { %272 = sbr.rel (%p269_p8) target bundleno = 397 (0x18d), region = 51  ;;  %s1286_s30 = sshll.u32 (!%p269_p8), %s275_s28, 8 }
  0x35   : > { %p315_p9 = scmp.lt.s32.totalorder (!%p269_p8), %s1287_s29, 127  ;;  %s1886_s8 = scalar_lea.vmem (!%p269_p8), [#allocation3], %s1286_s30 }
  0x36   : > { %p1289_p10 = scmp.ne.s32.totalorder (!%p269_p8), %s1735_s14, 0 }
  0x39   : > { %s2058_s29 = smov (!%p315_p9, %s1287_s29), 127  ;;  %338 = sbr.rel (%p1289_p10) target bundleno = 79 (0x4f), region = 59 }
  0x3a   : > { %s1288_s4 = sshll.u32 %s2058_s29, 2 }
  0x3b   : > { %s1884_s7 = scalar_lea.vmem %s2048_s1, %s1288_s4 }
  0x3e   : > { %v1745_v32 = vmov 0.0  }
  0x3f   : > { %339 = vst [vmem:[#allocation2 + $0x30] sm:$0xff] %v1745_v32 }
  0x40   : > { %340 = vst [vmem:[#allocation2] sm:$0xff] %v1745_v32 }
  0x41   : > { %341 = vst [vmem:[#allocation2 + $0x58] sm:$0xff] %v1745_v32 }
  0x42   : > { %342 = vst [vmem:[#allocation2 + $0x18] sm:$0xff] %v1745_v32 }
  0x43   : > { %343 = vst [vmem:[#allocation2 + $0x50] sm:$0xff] %v1745_v32 }
  0x44   : > { %344 = vst [vmem:[#allocation2 + $0x68] sm:$0xff] %v1745_v32 }
  0x45   : > { %345 = vst [vmem:[#allocation2 + $0x8] sm:$0xff] %v1745_v32 }
  0x46   : > { %346 = vst [vmem:[#allocation2 + $0x48] sm:$0xff] %v1745_v32 }
  0x47   : > { %347 = vst [vmem:[#allocation2 + $0x40] sm:$0xff] %v1745_v32 }
  0x48   : > { %348 = vst [vmem:[#allocation2 + $0x20] sm:$0xff] %v1745_v32 }
  0x49   : > { %349 = vst [vmem:[#allocation2 + $0x10] sm:$0xff] %v1745_v32 }
  0x4a   : > { %350 = vst [vmem:[#allocation2 + $0x38] sm:$0xff] %v1745_v32 }
  0x4b   : > { %351 = vst [vmem:[#allocation2 + $0x60] sm:$0xff] %v1745_v32 }
  0x4c   : > { %352 = vst [vmem:[#allocation2 + $0x70] sm:$0xff] %v1745_v32 }
  0x4d   : > { %353 = vst [vmem:[#allocation2 + $0x78] sm:$0xff] %v1745_v32 }
  0x4e   : > { %354 = vst [vmem:[#allocation2 + $0x28] sm:$0xff] %v1745_v32 }
  0x4f PF: > { %v1591_v33 = vld [vmem:[%s1884_s7 + $0x38] sm:$0xff]  ;;  %v1590_v37 = vld [vmem:[%s1884_s7 + $0x30] sm:$0xff]  ;;  %v1589_v41 = vld [vmem:[%s1884_s7 + $0x28] sm:$0xff]  ;;  %p1546_p11 = scmp.ne.s32.totalorder %s1735_s14, 1 }
  0x50   : > { %v1599_v34 = vld [vmem:[%s1884_s7 + $0x78] sm:$0xff]  ;;  %819 = vmatpush.bf16.msra.mxu0 %v1591_v33  ;;  %v1598_v38 = vld [vmem:[%s1884_s7 + $0x70] sm:$0xff]  ;;  %v1597_v42 = vld [vmem:[%s1884_s7 + $0x68] sm:$0xff] }
  0x51   : > { %v1607_v35 = vld [vmem:[%s1884_s7 + $0xb8] sm:$0xff]  ;;  %868 = vmatpush.bf16.msra.mxu1 %v1599_v34  ;;  %v1606_v39 = vld [vmem:[%s1884_s7 + $0xb0] sm:$0xff]  ;;  %v1605_v43 = vld [vmem:[%s1884_s7 + $0xa8] sm:$0xff] }
  0x52   : > { %v1615_v36 = vld [vmem:[%s1884_s7 + $0xf8] sm:$0xff]  ;;  %917 = vmatpush.bf16.msra.mxu2 %v1607_v35  ;;  %v1614_v40 = vld [vmem:[%s1884_s7 + $0xf0] sm:$0xff]  ;;  %v1613_v44 = vld [vmem:[%s1884_s7 + $0xe8] sm:$0xff] }
  0x53   : > { %966 = vmatpush.bf16.msra.mxu3 %v1615_v36  ;;  %v1588_v45 = vld [vmem:[%s1884_s7 + $0x20] sm:$0xff]  ;;  %v1587_v49 = vld [vmem:[%s1884_s7 + $0x18] sm:$0xff]  ;;  %v1586_v53 = vld [vmem:[%s1884_s7 + $0x10] sm:$0xff] }
  0x54   : > { %820 = vmatpush.bf16.msra.mxu0 %v1590_v37  ;;  %v1596_v46 = vld [vmem:[%s1884_s7 + $0x60] sm:$0xff]  ;;  %v1595_v50 = vld [vmem:[%s1884_s7 + $0x58] sm:$0xff]  ;;  %v1594_v54 = vld [vmem:[%s1884_s7 + $0x50] sm:$0xff] }
  0x55   : > { %869 = vmatpush.bf16.msra.mxu1 %v1598_v38  ;;  %v1604_v47 = vld [vmem:[%s1884_s7 + $0xa0] sm:$0xff]  ;;  %v1603_v51 = vld [vmem:[%s1884_s7 + $0x98] sm:$0xff]  ;;  %v1602_v55 = vld [vmem:[%s1884_s7 + $0x90] sm:$0xff] }
  0x56   : > { %918 = vmatpush.bf16.msra.mxu2 %v1606_v39  ;;  %v1612_v48 = vld [vmem:[%s1884_s7 + $0xe0] sm:$0xff]  ;;  %v1611_v52 = vld [vmem:[%s1884_s7 + $0xd8] sm:$0xff]  ;;  %v1610_v56 = vld [vmem:[%s1884_s7 + $0xd0] sm:$0xff] }
  0x57   : > { %967 = vmatpush.bf16.msra.mxu3 %v1614_v40  ;;  %v1585_v57 = vld [vmem:[%s1884_s7 + $0x8] sm:$0xff]  ;;  %v1584_v61 = vld [vmem:[%s1884_s7] sm:$0xff]  ;;  %v1554_v2 = vld [vmem:[%s1886_s8 + $0xc] sm:$0xf0] }
  0x58   : > { %821 = vmatpush.bf16.msra.mxu0 %v1589_v41  ;;  %v1593_v58 = vld [vmem:[%s1884_s7 + $0x48] sm:$0xff]  ;;  %v1592_v62 = vld [vmem:[%s1884_s7 + $0x40] sm:$0xff]  ;;  %v1294_v4 = vld [vmem:[%s1886_s8 + $0x10] sm:$0xf0] }
  0x59   : > { %870 = vmatpush.bf16.msra.mxu1 %v1597_v42  ;;  %v1601_v59 = vld [vmem:[%s1884_s7 + $0x88] sm:$0xff]  ;;  %v1600_v63 = vld [vmem:[%s1884_s7 + $0x80] sm:$0xff]  ;;  %v1555_v6 = vld [vmem:[%s1886_s8 + $0x14] sm:$0xf0] }
  0x5a   : > { %919 = vmatpush.bf16.msra.mxu2 %v1605_v43  ;;  %v1609_v60 = vld [vmem:[%s1884_s7 + $0xc8] sm:$0xff]  ;;  %v1608_v0 = vld [vmem:[%s1884_s7 + $0xc0] sm:$0xff]  ;;  %v1302_v8 = vld [vmem:[%s1886_s8 + $0x18] sm:$0xf0] }
  0x5b   : > { %968 = vmatpush.bf16.msra.mxu3 %v1613_v44  ;;  %v1292_v1 = vld [vmem:[%s1886_s8] sm:$0xf]  ;;  %v1552_v3 = vld [vmem:[%s1886_s8 + $0x4] sm:$0xf]  ;;  %v1300_v5 = vld [vmem:[%s1886_s8 + $0x8] sm:$0xf] }
  0x5c   : > { %822 = vmatpush.bf16.msra.mxu0 %v1588_v45  ;;  %v1553_v7 = vld [vmem:[%s1886_s8 + $0xc] sm:$0xf]  ;;  %v1293_v9 = vor.u32 %v1554_v2, %v1292_v1  ;;  %v1297_v10 = vor.u32 %v1552_v3, %v1294_v4  ;;  %v1301_v11 = vor.u32 %v1555_v6, %v1300_v5  ;;  %v1308_v13 = vld [vmem:[%s1886_s8 + $0x20] sm:$0xf]  ;;  %v1558_v14 = vld [vmem:[%s1886_s8 + $0x2c] sm:$0xf0] }
  0x5d   : > { %871 = vmatpush.bf16.msra.mxu1 %v1596_v46  ;;  %v1305_v12 = vor.u32 %v1553_v7, %v1302_v8  ;;  %v1556_v15 = vld [vmem:[%s1886_s8 + $0x24] sm:$0xf]  ;;  %v1310_v16 = vld [vmem:[%s1886_s8 + $0x30] sm:$0xf0]  ;;  %v1316_v17 = vld [vmem:[%s1886_s8 + $0x28] sm:$0xf]  ;;  %v1309_v21 = vor.u32 %v1558_v14, %v1308_v13 }
  0x5e   : > { %920 = vmatpush.bf16.msra.mxu2 %v1604_v47  ;;  %v1559_v18 = vld [vmem:[%s1886_s8 + $0x34] sm:$0xf0]  ;;  %v1557_v19 = vld [vmem:[%s1886_s8 + $0x2c] sm:$0xf]  ;;  %v1318_v20 = vld [vmem:[%s1886_s8 + $0x38] sm:$0xf0]  ;;  %v1313_v22 = vor.u32 %v1556_v15, %v1310_v16 }
  0x5f   : > { %969 = vmatpush.bf16.msra.mxu3 %v1612_v48  ;;  %v1317_v23 = vor.u32 %v1559_v18, %v1316_v17  ;;  %v1321_v24 = vor.u32 %v1557_v19, %v1318_v20  ;;  %v1324_v25 = vld [vmem:[%s1886_s8 + $0x40] sm:$0xf]  ;;  %v1562_v26 = vld [vmem:[%s1886_s8 + $0x4c] sm:$0xf0]  ;;  %v1560_v27 = vld [vmem:[%s1886_s8 + $0x44] sm:$0xf] }
  0x60   : > { %823 = vmatpush.bf16.msra.mxu0 %v1587_v49  ;;  %v1326_v28 = vld [vmem:[%s1886_s8 + $0x50] sm:$0xf0]  ;;  %v1332_v29 = vld [vmem:[%s1886_s8 + $0x48] sm:$0xf]  ;;  %v1563_v30 = vld [vmem:[%s1886_s8 + $0x54] sm:$0xf0]  ;;  %v1325_v33 = vor.u32 %v1562_v26, %v1324_v25 }
  0x61   : > { %872 = vmatpush.bf16.msra.mxu1 %v1595_v50  ;;  %v1561_v31 = vld [vmem:[%s1886_s8 + $0x4c] sm:$0xf]  ;;  %v1334_v32 = vld [vmem:[%s1886_s8 + $0x58] sm:$0xf0]  ;;  %v1329_v34 = vor.u32 %v1560_v27, %v1326_v28  ;;  %v1333_v35 = vor.u32 %v1563_v30, %v1332_v29  ;;  %v1340_v37 = vld [vmem:[%s1886_s8 + $0x60] sm:$0xf] }
  0x62   : > { %921 = vmatpush.bf16.msra.mxu2 %v1603_v51  ;;  %v1337_v36 = vor.u32 %v1561_v31, %v1334_v32  ;;  %v1566_v38 = vld [vmem:[%s1886_s8 + $0x6c] sm:$0xf0]  ;;  %v1564_v39 = vld [vmem:[%s1886_s8 + $0x64] sm:$0xf]  ;;  %v1342_v40 = vld [vmem:[%s1886_s8 + $0x70] sm:$0xf0] }
  0x63   : > { %970 = vmatpush.bf16.msra.mxu3 %v1611_v52  ;;  %v1348_v41 = vld [vmem:[%s1886_s8 + $0x68] sm:$0xf]  ;;  %v1567_v42 = vld [vmem:[%s1886_s8 + $0x74] sm:$0xf0]  ;;  %v1565_v43 = vld [vmem:[%s1886_s8 + $0x6c] sm:$0xf]  ;;  %v1341_v45 = vor.u32 %v1566_v38, %v1340_v37  ;;  %v1345_v46 = vor.u32 %v1564_v39, %v1342_v40 }
  0x64   : > { %824 = vmatpush.bf16.msra.mxu0 %v1586_v53  ;;  %v1350_v44 = vld [vmem:[%s1886_s8 + $0x78] sm:$0xf0]  ;;  %v1349_v47 = vor.u32 %v1567_v42, %v1348_v41  ;;  %v1356_v49 = vld [vmem:[%s1886_s8 + $0x80] sm:$0xf]  ;;  %v1570_v50 = vld [vmem:[%s1886_s8 + $0x8c] sm:$0xf0] }
  0x65   : > { %873 = vmatpush.bf16.msra.mxu1 %v1594_v54  ;;  %v1353_v48 = vor.u32 %v1565_v43, %v1350_v44  ;;  %v1568_v51 = vld [vmem:[%s1886_s8 + $0x84] sm:$0xf]  ;;  %v1358_v52 = vld [vmem:[%s1886_s8 + $0x90] sm:$0xf0]  ;;  %v1364_v53 = vld [vmem:[%s1886_s8 + $0x88] sm:$0xf] }
  0x66   : > { %922 = vmatpush.bf16.msra.mxu2 %v1602_v55  ;;  %v1571_v54 = vld [vmem:[%s1886_s8 + $0x94] sm:$0xf0]  ;;  %v1569_v55 = vld [vmem:[%s1886_s8 + $0x8c] sm:$0xf]  ;;  %v1380_v1 = vld [vmem:[%s1886_s8 + $0xa8] sm:$0xf] }
  0x67   : > { %971 = vmatpush.bf16.msra.mxu3 %v1610_v56  ;;  %v1366_v56 = vld [vmem:[%s1886_s8 + $0x98] sm:$0xf0]  ;;  %v1575_v2 = vld [vmem:[%s1886_s8 + $0xb4] sm:$0xf0]  ;;  %v1573_v3 = vld [vmem:[%s1886_s8 + $0xac] sm:$0xf] }
  0x68   : > { %825 = vmatpush.bf16.msra.mxu0 %v1585_v57  ;;  %v1357_v57 = vor.u32 %v1570_v50, %v1356_v49  ;;  %v1382_v4 = vld [vmem:[%s1886_s8 + $0xb8] sm:$0xf0]  ;;  %v1381_v7 = vor.u32 %v1575_v2, %v1380_v1  ;;  %v1396_v13 = vld [vmem:[%s1886_s8 + $0xc8] sm:$0xf]  ;;  %v1579_v14 = vld [vmem:[%s1886_s8 + $0xd4] sm:$0xf0] }
  0x69   : > { %874 = vmatpush.bf16.msra.mxu1 %v1593_v58  ;;  %v1361_v58 = vor.u32 %v1568_v51, %v1358_v52  ;;  %v1385_v8 = vor.u32 %v1573_v3, %v1382_v4  ;;  %v1577_v15 = vld [vmem:[%s1886_s8 + $0xcc] sm:$0xf]  ;;  %v1398_v16 = vld [vmem:[%s1886_s8 + $0xd8] sm:$0xf0]  ;;  %v1397_v19 = vor.u32 %v1579_v14, %v1396_v13  ;;  %v1412_v25 = vld [vmem:[%s1886_s8 + $0xe8] sm:$0xf] }
  0x6a   : > { %923 = vmatpush.bf16.msra.mxu2 %v1601_v59  ;;  %v1365_v59 = vor.u32 %v1571_v54, %v1364_v53  ;;  %v1401_v20 = vor.u32 %v1577_v15, %v1398_v16  ;;  %v1583_v26 = vld [vmem:[%s1886_s8 + $0xf4] sm:$0xf0]  ;;  %v1581_v27 = vld [vmem:[%s1886_s8 + $0xec] sm:$0xf]  ;;  %v1414_v28 = vld [vmem:[%s1886_s8 + $0xf8] sm:$0xf0] }
  0x6b   : > { %972 = vmatpush.bf16.msra.mxu3 %v1609_v60  ;;  %v1369_v60 = vor.u32 %v1569_v55, %v1366_v56  ;;  %v1413_v31 = vor.u32 %v1583_v26, %v1412_v25  ;;  %v1417_v32 = vor.u32 %v1581_v27, %v1414_v28  ;;  %v355_v41 = vld [vmem:[#allocation2 + $0x30] sm:$0xff]  ;;  %v356_v50 = vld [vmem:[#allocation2] sm:$0xff]  ;;  %v358_v4 = vld [vmem:[#allocation2 + $0x18] sm:$0xff] }
  0x6c   : > { %826 = vmatpush.bf16.msra.mxu0 %v1584_v61  ;;  %v1372_v61 = vld [vmem:[%s1886_s8 + $0xa0] sm:$0xf]  ;;  %v359_v13 = vld [vmem:[#allocation2 + $0x50] sm:$0xff] }
  0x6d   : > { %875 = vmatpush.bf16.msra.mxu1 %v1592_v62  ;;  %v1574_v62 = vld [vmem:[%s1886_s8 + $0xac] sm:$0xf0] }
  0x6e   : > { %924 = vmatpush.bf16.msra.mxu2 %v1600_v63  ;;  %v1572_v63 = vld [vmem:[%s1886_s8 + $0xa4] sm:$0xf]  ;;  %v1373_v5 = vor.u32 %v1574_v62, %v1372_v61 }
  0x6f   : > { %973 = vmatpush.bf16.msra.mxu3 %v1608_v0  ;;  %827 = vmatmul.bf16.vlgmr.msra.gmra.mxu0 %v1293_v9  ;;  %v1374_v0 = vld [vmem:[%s1886_s8 + $0xb0] sm:$0xf0]  ;;  %v1388_v9 = vld [vmem:[%s1886_s8 + $0xc0] sm:$0xf] }
  0x70   : > { %876 = vmatmul.bf16.vlgmr.msra.gmra.mxu1 %v1297_v10  ;;  %v1377_v6 = vor.u32 %v1572_v63, %v1374_v0  ;;  %v1578_v10 = vld [vmem:[%s1886_s8 + $0xcc] sm:$0xf0] }
  0x71   : > { %925 = vmatmul.bf16.vlgmr.msra.gmra.mxu2 %v1301_v11  ;;  %v1576_v11 = vld [vmem:[%s1886_s8 + $0xc4] sm:$0xf]  ;;  %v1389_v17 = vor.u32 %v1578_v10, %v1388_v9 }
  0x72   : > { %974 = vmatmul.bf16.vlgmr.msra.gmra.mxu3 %v1305_v12  ;;  %v1390_v12 = vld [vmem:[%s1886_s8 + $0xd0] sm:$0xf0] }
  0x73   : > { %v1393_v18 = vor.u32 %v1576_v11, %v1390_v12 }
  0x7f   : > { %832 = vmatmul.bf16.gmra.mxu0 %v1309_v21  ;;  %v1404_v21 = vld [vmem:[%s1886_s8 + $0xe0] sm:$0xf] }
  0x80   : > { %881 = vmatmul.bf16.gmra.mxu1 %v1313_v22  ;;  %v1582_v22 = vld [vmem:[%s1886_s8 + $0xec] sm:$0xf0] }
  0x81   : > { %930 = vmatmul.bf16.gmra.mxu2 %v1317_v23  ;;  %v1580_v23 = vld [vmem:[%s1886_s8 + $0xe4] sm:$0xf]  ;;  %v1405_v29 = vor.u32 %v1582_v22, %v1404_v21  ;;  %v360_v22 = vld [vmem:[#allocation2 + $0x68] sm:$0xff] }
  0x82   : > { %979 = vmatmul.bf16.gmra.mxu3 %v1321_v24  ;;  %v1406_v24 = vld [vmem:[%s1886_s8 + $0xf0] sm:$0xf0] }
  0x83   : > { %v1409_v30 = vor.u32 %v1580_v23, %v1406_v24 }
  0x8f   : > { %837 = vmatmul.bf16.gmra.mxu0 %v1325_v33 }
  0x90   : > { %886 = vmatmul.bf16.gmra.mxu1 %v1329_v34 }
  0x91   : > { %935 = vmatmul.bf16.gmra.mxu2 %v1333_v35 }
  0x92   : > { %984 = vmatmul.bf16.gmra.mxu3 %v1337_v36 }
  0x9f   : > { %842 = vmatmul.bf16.gmra.mxu0 %v1341_v45 }
  0xa0   : > { %891 = vmatmul.bf16.gmra.mxu1 %v1345_v46 }
  0xa1   : > { %940 = vmatmul.bf16.gmra.mxu2 %v1349_v47 }
  0xa2   : > { %989 = vmatmul.bf16.gmra.mxu3 %v1353_v48 }
  0xaf   : > { %847 = vmatmul.bf16.gmra.mxu0 %v1357_v57 }
  0xb0   : > { %896 = vmatmul.bf16.gmra.mxu1 %v1361_v58 }
  0xb1   : > { %945 = vmatmul.bf16.gmra.mxu2 %v1365_v59  ;;  %v357_v59 = vld [vmem:[#allocation2 + $0x58] sm:$0xff] }
  0xb2   : > { %994 = vmatmul.bf16.gmra.mxu3 %v1369_v60 }
  0xbf   : > { %852 = vmatmul.bf16.gmra.mxu0 %v1373_v5 }
  0xc0   : > { %901 = vmatmul.bf16.gmra.mxu1 %v1377_v6 }
  0xc1   : > { %950 = vmatmul.bf16.gmra.mxu2 %v1381_v7 }
  0xc2   : > { %999 = vmatmul.bf16.gmra.mxu3 %v1385_v8 }
  0xcf   : > { %857 = vmatmul.bf16.gmra.mxu0 %v1389_v17 }
  0xd0   : > { %906 = vmatmul.bf16.gmra.mxu1 %v1393_v18 }
  0xd1   : > { %955 = vmatmul.bf16.gmra.mxu2 %v1397_v19 }
  0xd2   : > { %1004 = vmatmul.bf16.gmra.mxu3 %v1401_v20 }
  0xdf   : > { %862 = vmatmul.bf16.gmra.mxu0 %v1405_v29 }
  0xe0   : > { %911 = vmatmul.bf16.gmra.mxu1 %v1409_v30 }
  0xe1   : > { %960 = vmatmul.bf16.gmra.mxu2 %v1413_v31  ;;  %v361_v31 = vld [vmem:[#allocation2 + $0x8] sm:$0xff] }
  0xe2   : > { %1009 = vmatmul.bf16.gmra.mxu3 %v1417_v32 }
  0xec   : > { %v828_v33 = vpop.f32.mrf.mxu0 }
  0xed   : > { %v877_v34 = vpop.f32.mrf.mxu1 }
  0xee   : > { %v878_v35 = vadd.f32 %v877_v34, %v828_v33 }
  0xf4   : > { %v926_v36 = vpop.f32.mrf.mxu2  ;;  %v830_v39 = vpop.f32.mrf.mxu0 }
  0xf5   : > { %v975_v37 = vpop.f32.mrf.mxu3  ;;  %v927_v38 = vadd.f32 %v926_v36, %v878_v35  ;;  %v879_v40 = vpop.f32.mrf.mxu1 }
  0xf6   : > { %v880_v44 = vadd.f32 %v879_v40, %v830_v39  ;;  %v362_v40 = vld [vmem:[#allocation2 + $0x48] sm:$0xff] }
  0xf7   : > { %v976_v42 = vadd.f32 %v975_v37, %v927_v38 }
  0xf9   : > { %v1015_v43 = vadd.f32 %v976_v42, %v355_v41 }
  0xfb   : > { %1031 = vst [vmem:[#allocation2 + $0x30] sm:$0xff] %v1015_v43 }
  0xfc   : > { %v928_v45 = vpop.f32.mrf.mxu2  ;;  %v833_v48 = vpop.f32.mrf.mxu0 }
  0xfd   : > { %v977_v46 = vpop.f32.mrf.mxu3  ;;  %v929_v47 = vadd.f32 %v928_v45, %v880_v44  ;;  %v882_v49 = vpop.f32.mrf.mxu1 }
  0xfe   : > { %v883_v53 = vadd.f32 %v882_v49, %v833_v48  ;;  %v363_v49 = vld [vmem:[#allocation2 + $0x40] sm:$0xff] }
  0xff   : > { %v978_v51 = vadd.f32 %v977_v46, %v929_v47 }
 0x101   : > { %v1016_v52 = vadd.f32 %v978_v51, %v356_v50 }
 0x103   : > { %1032 = vst [vmem:[#allocation2] sm:$0xff] %v1016_v52 }
 0x104   : > { %v931_v54 = vpop.f32.mrf.mxu2  ;;  %v835_v57 = vpop.f32.mrf.mxu0 }
 0x105   : > { %v980_v55 = vpop.f32.mrf.mxu3  ;;  %v932_v56 = vadd.f32 %v931_v54, %v883_v53  ;;  %v884_v58 = vpop.f32.mrf.mxu1 }
 0x106   : > { %v885_v62 = vadd.f32 %v884_v58, %v835_v57  ;;  %v364_v58 = vld [vmem:[#allocation2 + $0x20] sm:$0xff] }
 0x107   : > { %v981_v60 = vadd.f32 %v980_v55, %v932_v56 }
 0x109   : > { %v1017_v61 = vadd.f32 %v981_v60, %v357_v59 }
 0x10b   : > { %1033 = vst [vmem:[#allocation2 + $0x58] sm:$0xff] %v1017_v61 }
 0x10c   : > { %v933_v63 = vpop.f32.mrf.mxu2  ;;  %v838_v2 = vpop.f32.mrf.mxu0 }
 0x10d   : > { %v982_v0 = vpop.f32.mrf.mxu3  ;;  %v934_v1 = vadd.f32 %v933_v63, %v885_v62  ;;  %v887_v3 = vpop.f32.mrf.mxu1 }
 0x10e   : > { %v888_v7 = vadd.f32 %v887_v3, %v838_v2  ;;  %v365_v3 = vld [vmem:[#allocation2 + $0x10] sm:$0xff] }
 0x10f   : > { %v983_v5 = vadd.f32 %v982_v0, %v934_v1 }
 0x111   : > { %v1018_v6 = vadd.f32 %v983_v5, %v358_v4 }
 0x113   : > { %1034 = vst [vmem:[#allocation2 + $0x18] sm:$0xff] %v1018_v6 }
 0x114   : > { %v936_v8 = vpop.f32.mrf.mxu2  ;;  %v840_v11 = vpop.f32.mrf.mxu0 }
 0x115   : > { %v985_v9 = vpop.f32.mrf.mxu3  ;;  %v937_v10 = vadd.f32 %v936_v8, %v888_v7  ;;  %v889_v12 = vpop.f32.mrf.mxu1 }
 0x116   : > { %v890_v16 = vadd.f32 %v889_v12, %v840_v11  ;;  %v366_v12 = vld [vmem:[#allocation2 + $0x38] sm:$0xff] }
 0x117   : > { %v986_v14 = vadd.f32 %v985_v9, %v937_v10 }
 0x119   : > { %v1019_v15 = vadd.f32 %v986_v14, %v359_v13 }
 0x11b   : > { %1035 = vst [vmem:[#allocation2 + $0x50] sm:$0xff] %v1019_v15 }
 0x11c   : > { %v938_v17 = vpop.f32.mrf.mxu2  ;;  %v843_v20 = vpop.f32.mrf.mxu0 }
 0x11d   : > { %v987_v18 = vpop.f32.mrf.mxu3  ;;  %v939_v19 = vadd.f32 %v938_v17, %v890_v16  ;;  %v892_v21 = vpop.f32.mrf.mxu1 }
 0x11e   : > { %v893_v25 = vadd.f32 %v892_v21, %v843_v20  ;;  %v367_v21 = vld [vmem:[#allocation2 + $0x60] sm:$0xff] }
 0x11f   : > { %v988_v23 = vadd.f32 %v987_v18, %v939_v19 }
 0x121   : > { %v1020_v24 = vadd.f32 %v988_v23, %v360_v22 }
 0x123   : > { %1036 = vst [vmem:[#allocation2 + $0x68] sm:$0xff] %v1020_v24 }
 0x124   : > { %v941_v26 = vpop.f32.mrf.mxu2  ;;  %v845_v29 = vpop.f32.mrf.mxu0 }
 0x125   : > { %v990_v27 = vpop.f32.mrf.mxu3  ;;  %v942_v28 = vadd.f32 %v941_v26, %v893_v25  ;;  %v894_v30 = vpop.f32.mrf.mxu1 }
 0x126   : > { %v895_v34 = vadd.f32 %v894_v30, %v845_v29 }
 0x127   : > { %v991_v32 = vadd.f32 %v990_v27, %v942_v28  ;;  %v368_v28 = vld [vmem:[#allocation2 + $0x70] sm:$0xff] }
 0x129   : > { %v1021_v33 = vadd.f32 %v991_v32, %v361_v31 }
 0x12b   : > { %1037 = vst [vmem:[#allocation2 + $0x8] sm:$0xff] %v1021_v33 }
 0x12c   : > { %v943_v35 = vpop.f32.mrf.mxu2  ;;  %v848_v38 = vpop.f32.mrf.mxu0 }
 0x12d   : > { %v992_v36 = vpop.f32.mrf.mxu3  ;;  %v944_v37 = vadd.f32 %v943_v35, %v895_v34  ;;  %v897_v39 = vpop.f32.mrf.mxu1 }
 0x12e   : > { %v898_v43 = vadd.f32 %v897_v39, %v848_v38 }
 0x12f   : > { %v993_v41 = vadd.f32 %v992_v36, %v944_v37  ;;  %v369_v37 = vld [vmem:[#allocation2 + $0x78] sm:$0xff] }
 0x131   : > { %v1022_v42 = vadd.f32 %v993_v41, %v362_v40 }
 0x133   : > { %1038 = vst [vmem:[#allocation2 + $0x48] sm:$0xff] %v1022_v42 }
 0x134   : > { %v946_v44 = vpop.f32.mrf.mxu2  ;;  %v850_v47 = vpop.f32.mrf.mxu0 }
 0x135   : > { %v995_v45 = vpop.f32.mrf.mxu3  ;;  %v947_v46 = vadd.f32 %v946_v44, %v898_v43  ;;  %v899_v48 = vpop.f32.mrf.mxu1 }
 0x136   : > { %v900_v52 = vadd.f32 %v899_v48, %v850_v47 }
 0x137   : > { %v996_v50 = vadd.f32 %v995_v45, %v947_v46  ;;  %v370_v45 = vld [vmem:[#allocation2 + $0x28] sm:$0xff] }
 0x139   : > { %v1023_v51 = vadd.f32 %v996_v50, %v363_v49 }
 0x13b   : > { %1039 = vst [vmem:[#allocation2 + $0x40] sm:$0xff] %v1023_v51 }
 0x13c   : > { %v948_v53 = vpop.f32.mrf.mxu2  ;;  %v853_v56 = vpop.f32.mrf.mxu0 }
 0x13d   : > { %v997_v54 = vpop.f32.mrf.mxu3  ;;  %v949_v55 = vadd.f32 %v948_v53, %v900_v52  ;;  %v902_v57 = vpop.f32.mrf.mxu1 }
 0x13e   : > { %v903_v61 = vadd.f32 %v902_v57, %v853_v56 }
 0x13f   : > { %v998_v59 = vadd.f32 %v997_v54, %v949_v55 }
 0x141   : > { %v1024_v60 = vadd.f32 %v998_v59, %v364_v58 }
 0x143   : > { %1040 = vst [vmem:[#allocation2 + $0x20] sm:$0xff] %v1024_v60 }
 0x144   : > { %v951_v62 = vpop.f32.mrf.mxu2  ;;  %v855_v1 = vpop.f32.mrf.mxu0 }
 0x145   : > { %v1000_v63 = vpop.f32.mrf.mxu3  ;;  %v952_v0 = vadd.f32 %v951_v62, %v903_v61  ;;  %v904_v2 = vpop.f32.mrf.mxu1 }
 0x146   : > { %v905_v6 = vadd.f32 %v904_v2, %v855_v1 }
 0x147   : > { %v1001_v4 = vadd.f32 %v1000_v63, %v952_v0 }
 0x149   : > { %v1025_v5 = vadd.f32 %v1001_v4, %v365_v3 }
 0x14b   : > { %1041 = vst [vmem:[#allocation2 + $0x10] sm:$0xff] %v1025_v5 }
 0x14c   : > { %v953_v7 = vpop.f32.mrf.mxu2  ;;  %v858_v10 = vpop.f32.mrf.mxu0 }
 0x14d   : > { %v1002_v8 = vpop.f32.mrf.mxu3  ;;  %v954_v9 = vadd.f32 %v953_v7, %v905_v6  ;;  %v907_v11 = vpop.f32.mrf.mxu1 }
 0x14e   : > { %v908_v15 = vadd.f32 %v907_v11, %v858_v10 }
 0x14f   : > { %v1003_v13 = vadd.f32 %v1002_v8, %v954_v9 }
 0x151   : > { %v1026_v14 = vadd.f32 %v1003_v13, %v366_v12 }
 0x153   : > { %1042 = vst [vmem:[#allocation2 + $0x38] sm:$0xff] %v1026_v14 }
 0x154   : > { %v956_v16 = vpop.f32.mrf.mxu2  ;;  %v860_v19 = vpop.f32.mrf.mxu0 }
 0x155   : > { %v1005_v17 = vpop.f32.mrf.mxu3  ;;  %v957_v18 = vadd.f32 %v956_v16, %v908_v15  ;;  %v909_v20 = vpop.f32.mrf.mxu1 }
 0x156   : > { %v910_v24 = vadd.f32 %v909_v20, %v860_v19 }
 0x157   : > { %v1006_v22 = vadd.f32 %v1005_v17, %v957_v18 }
 0x159   : > { %v1027_v23 = vadd.f32 %v1006_v22, %v367_v21 }
 0x15b   : > { %1043 = vst [vmem:[#allocation2 + $0x60] sm:$0xff] %v1027_v23 }
 0x15c   : > { %v958_v25 = vpop.f32.mrf.mxu2  ;;  %v863_v29 = vpop.f32.mrf.mxu0 }
 0x15d   : > { %v1007_v26 = vpop.f32.mrf.mxu3  ;;  %v959_v27 = vadd.f32 %v958_v25, %v910_v24  ;;  %v912_v30 = vpop.f32.mrf.mxu1 }
 0x15e   : > { %v913_v33 = vadd.f32 %v912_v30, %v863_v29 }
 0x15f   : > { %v1008_v31 = vadd.f32 %v1007_v26, %v959_v27 }
 0x161   : > { %v1028_v32 = vadd.f32 %v1008_v31, %v368_v28 }
 0x163   : > { %1044 = vst [vmem:[#allocation2 + $0x70] sm:$0xff] %v1028_v32 }
 0x164   : > { %v961_v34 = vpop.f32.mrf.mxu2  ;;  %v865_v39 = vpop.f32.mrf.mxu0 }
 0x165   : > { %v1010_v35 = vpop.f32.mrf.mxu3  ;;  %v962_v36 = vadd.f32 %v961_v34, %v913_v33  ;;  %v914_v40 = vpop.f32.mrf.mxu1 }
 0x166   : > { %v915_v42 = vadd.f32 %v914_v40, %v865_v39 }
 0x167   : > { %v1011_v38 = vadd.f32 %v1010_v35, %v962_v36 }
 0x169   : > { %v1029_v41 = vadd.f32 %v1011_v38, %v369_v37 }
 0x16b   : > { %1045 = vst [vmem:[#allocation2 + $0x78] sm:$0xff] %v1029_v41 }
 0x16c   : > { %v963_v43 = vpop.f32.mrf.mxu2 }
 0x16d   : > { %v964_v44 = vadd.f32 %v963_v43, %v915_v42  ;;  %v1012_v46 = vpop.f32.mrf.mxu3 }
 0x16f   : > { %v1013_v47 = vadd.f32 %v1012_v46, %v964_v44  ;;  %1050 = sbr.rel (%p1546_p11) target bundleno = 397 (0x18d), region = 63 }
 0x171   : > { %v1030_v48 = vadd.f32 %v1013_v47, %v370_v45 }
 0x173   : > { %1046 = vst [vmem:[#allocation2 + $0x28] sm:$0xff] %v1030_v48 }
 0x174   : > { %v1051_v49 = vld [vmem:[#allocation2 + $0x30] sm:$0xff]  ;;  %v1052_v50 = vld [vmem:[#allocation2] sm:$0xff]  ;;  %v1053_v52 = vld [vmem:[#allocation2 + $0x58] sm:$0xff] }
 0x175   : > { %v1989_v51 = vld [vmem:[%s2049_s2] ss:$0 sm:$0xff]  ;;  %v1054_v53 = vld [vmem:[#allocation2 + $0x18] sm:$0xff]  ;;  %v1055_v54 = vld [vmem:[#allocation2 + $0x50] sm:$0xff] }
 0x176   : > { %v1056_v55 = vld [vmem:[#allocation2 + $0x68] sm:$0xff]  ;;  %v1071_v57 = vadd.f32 %v1989_v51, %v1051_v49  ;;  %v1072_v58 = vadd.f32 %v1989_v51, %v1052_v50  ;;  %v1073_v59 = vadd.f32 %v1989_v51, %v1053_v52  ;;  %v1074_v60 = vadd.f32 %v1989_v51, %v1054_v53  ;;  %v1059_v8 = vld [vmem:[#allocation2 + $0x40] sm:$0xff]  ;;  %v1061_v14 = vld [vmem:[#allocation2 + $0x10] sm:$0xff] }
 0x177   : > { %v1057_v56 = vld [vmem:[#allocation2 + $0x8] sm:$0xff]  ;;  %v1075_v62 = vadd.f32 %v1989_v51, %v1055_v54  ;;  %v1076_v63 = vadd.f32 %v1989_v51, %v1056_v55  ;;  %v1060_v13 = vld [vmem:[#allocation2 + $0x20] sm:$0xff]  ;;  %v1062_v15 = vld [vmem:[#allocation2 + $0x38] sm:$0xff]  ;;  %v1079_v21 = vadd.f32 %v1989_v51, %v1059_v8  ;;  %v1081_v24 = vadd.f32 %v1989_v51, %v1061_v14 }
 0x178   : > { %v1058_v61 = vld [vmem:[#allocation2 + $0x48] sm:$0xff]  ;;  %v1077_v0 = vadd.f32 %v1989_v51, %v1057_v56  ;;  %vm1087_vm0 = vcmp.gt.f32.partialorder %v1071_v57, 0.0  ;;  %vm1088_vm1 = vcmp.gt.f32.partialorder %v1072_v58, 0.0  ;;  %v1103_v2 = vmul.f32 0.2, %v1071_v57  ;;  %v1063_v26 = vld [vmem:[#allocation2 + $0x60] sm:$0xff] }
 0x179   : > { %v1078_v1 = vadd.f32 %v1989_v51, %v1058_v61  ;;  %v1104_v3 = vmul.f32 0.2, %v1072_v58  ;;  %vm1089_vm2 = vcmp.gt.f32.partialorder %v1073_v59, 0.0  ;;  %vm1090_vm3 = vcmp.gt.f32.partialorder %v1074_v60, 0.0  ;;  %v1064_v30 = vld [vmem:[#allocation2 + $0x70] sm:$0xff]  ;;  %v1065_v36 = vld [vmem:[#allocation2 + $0x78] sm:$0xff] }
 0x17a   : > { %v1105_v4 = vmul.f32 0.2, %v1073_v59  ;;  %v1106_v5 = vmul.f32 0.2, %v1074_v60  ;;  %v1119_v6 = vsel %vm1087_vm0, %v1071_v57, %v1103_v2  ;;  %vm1091_vm4 = vcmp.gt.f32.partialorder %v1075_v62, 0.0  ;;  %v1066_v41 = vld [vmem:[#allocation2 + $0x28] sm:$0xff] }
 0x17b   : > { %v1120_v7 = vsel %vm1088_vm1, %v1072_v58, %v1104_v3  ;;  %vm1092_vm5 = vcmp.gt.f32.partialorder %v1076_v63, 0.0  ;;  %v1107_v12 = vmul.f32 0.2, %v1075_v62  ;;  %v1108_v17 = vmul.f32 0.2, %v1076_v63 }
 0x17c   : > { %v1619_v9 = vpack.c.bf16 %v1120_v7, %v1119_v6  ;;  %v1121_v10 = vsel %vm1089_vm2, %v1073_v59, %v1105_v4  ;;  %v1122_v11 = vsel %vm1090_vm3, %v1074_v60, %v1106_v5  ;;  %vm1093_vm6 = vcmp.gt.f32.partialorder %v1077_v0, 0.0 }
 0x17d   : > { %v1624_v16 = vpack.c.bf16 %v1122_v11, %v1121_v10  ;;  %vm1094_vm7 = vcmp.gt.f32.partialorder %v1078_v1, 0.0  ;;  %v1123_v18 = vsel %vm1091_vm4, %v1075_v62, %v1107_v12  ;;  %v1109_v19 = vmul.f32 0.2, %v1077_v0 }
 0x17e   : > { %1620 = vst [vmem:[%s2050_s3] sm:$0xff] %v1619_v9   ;;  %v1110_v20 = vmul.f32 0.2, %v1078_v1  ;;  %v1124_v22 = vsel %vm1092_vm5, %v1076_v63, %v1108_v17  ;;  %v1080_v23 = vadd.f32 %v1989_v51, %v1060_v13  ;;  %v1082_v25 = vadd.f32 %v1989_v51, %v1062_v15 }
 0x17f   : > { %1656 = vst [vmem:[%s2050_s3 + $0x8] sm:$0xff] %v1624_v16   ;;  %v1629_v27 = vpack.c.bf16 %v1124_v22, %v1123_v18  ;;  %v1125_v28 = vsel %vm1093_vm6, %v1077_v0, %v1109_v19  ;;  %vm1095_vm8 = vcmp.gt.f32.partialorder %v1079_v21, 0.0  ;;  %v1111_v32 = vmul.f32 0.2, %v1079_v21 }
 0x180   : > { %v1126_v29 = vsel %vm1094_vm7, %v1078_v1, %v1110_v20  ;;  %vm1096_vm9 = vcmp.gt.f32.partialorder %v1080_v23, 0.0  ;;  %v1112_v33 = vmul.f32 0.2, %v1080_v23  ;;  %vm1097_vm10 = vcmp.gt.f32.partialorder %v1081_v24, 0.0 }
 0x181   : > { %v1634_v31 = vpack.c.bf16 %v1126_v29, %v1125_v28  ;;  %1657 = vst [vmem:[%s2050_s3 + $0x10] sm:$0xff] %v1629_v27   ;;  %vm1098_vm11 = vcmp.gt.f32.partialorder %v1082_v25, 0.0  ;;  %v1113_v34 = vmul.f32 0.2, %v1081_v24  ;;  %v1083_v35 = vadd.f32 %v1989_v51, %v1063_v26 }
 0x182   : > { %v1127_v37 = vsel %vm1095_vm8, %v1079_v21, %v1111_v32  ;;  %v1128_v38 = vsel %vm1096_vm9, %v1080_v23, %v1112_v33  ;;  %v1114_v39 = vmul.f32 0.2, %v1082_v25  ;;  %v1084_v40 = vadd.f32 %v1989_v51, %v1064_v30 }
 0x183   : > { %1658 = vst [vmem:[%s2050_s3 + $0x18] sm:$0xff] %v1634_v31   ;;  %v1639_v42 = vpack.c.bf16 %v1128_v38, %v1127_v37  ;;  %v1129_v43 = vsel %vm1097_vm10, %v1081_v24, %v1113_v34  ;;  %vm1099_vm12 = vcmp.gt.f32.partialorder %v1083_v35, 0.0  ;;  %v1115_v44 = vmul.f32 0.2, %v1083_v35 }
 0x184   : > { %v1130_v45 = vsel %vm1098_vm11, %v1082_v25, %v1114_v39  ;;  %vm1100_vm13 = vcmp.gt.f32.partialorder %v1084_v40, 0.0  ;;  %v1116_v46 = vmul.f32 0.2, %v1084_v40  ;;  %v1085_v47 = vadd.f32 %v1989_v51, %v1065_v36 }
 0x185   : > { %1659 = vst [vmem:[%s2050_s3 + $0x20] sm:$0xff] %v1639_v42   ;;  %v1644_v48 = vpack.c.bf16 %v1130_v45, %v1129_v43  ;;  %v1131_v49 = vsel %vm1099_vm12, %v1083_v35, %v1115_v44  ;;  %v1086_v50 = vadd.f32 %v1989_v51, %v1066_v41 }
 0x186   : > { %v1132_v52 = vsel %vm1100_vm13, %v1084_v40, %v1116_v46  ;;  %vm1101_vm14 = vcmp.gt.f32.partialorder %v1085_v47, 0.0  ;;  %v1117_v53 = vmul.f32 0.2, %v1085_v47 }
 0x187   : > { %1660 = vst [vmem:[%s2050_s3 + $0x28] sm:$0xff] %v1644_v48   ;;  %v1649_v54 = vpack.c.bf16 %v1132_v52, %v1131_v49  ;;  %vm1102_vm15 = vcmp.gt.f32.partialorder %v1086_v50, 0.0  ;;  %v1118_v55 = vmul.f32 0.2, %v1086_v50 }
 0x188   : > { %v1133_v56 = vsel %vm1101_vm14, %v1085_v47, %v1117_v53 }
 0x189   : > { %1661 = vst [vmem:[%s2050_s3 + $0x30] sm:$0xff] %v1649_v54   ;;  %v1134_v57 = vsel %vm1102_vm15, %v1086_v50, %v1118_v55 }
 0x18a   : > { %v1654_v58 = vpack.c.bf16 %v1134_v57, %v1133_v56 }
 0x18c   : > { %1662 = vst [vmem:[%s2050_s3 + $0x38] sm:$0xff] %v1654_v58  }
 0x18d PF: > { %s13_s16 = sadd.s32 1, %s1743_s16   ;;  %s2051_s12 = smov %s1731_s13 }
 0x18e   : > { %p10_p12 = scmp.ge.s32.totalorder %s13_s16, 4   ;;  %s2052_s13 = smov %s1801_s20 }
 0x18f   : > { %s2053_s14 = smov %s1739_s15  ;;  %s2054_s15 = smov %s2056_s17 }
 0x190   :  { %12 = sbr.rel (!%p10_p12) target bundleno = 3 (0x3), region = 104 }

// kernel: discriminator_forward.5
= control target key start
LH: loop header
LB: loop body
LE: loop exit
PB: predicated region body
PF: predicated region fallthrough
CT: control target
= control target key end

     0   :  { %s1588_s12 = smov 0   ;;  %s1590_s13 = smov 0   ;;  %s1846_s0 = inlined_call_operand.vmem [shape: bf16[32,2048], index: 0, kind: input, shape index: {}]   ;;  %s1847_s1 = inlined_call_operand.vmem [shape: bf16[2048,256], index: 1, kind: input, shape index: {}]   ;;  %s1848_s2 = inlined_call_operand.vmem [shape: f32[1,256], index: 2, kind: input, shape index: {}]   ;;  %s1849_s3 = inlined_call_operand.vmem [shape: bf16[32,256], index: 3, kind: output, shape index: {}]  }
   0x1   :  { %s1592_s14 = smov 0   ;;  %s1594_s15 = smov 0  }
   0x2   :  { %s1596_s16 = smov 0  }
   0x3 LB: > { %s25_s17 = sadd.s32 1, %s1561_s15  ;;  %p48_p1 = scmp.ne.s32.totalorder %s1553_s13, %s1549_s12  ;;  %s1565_s16 = sphi %s1596_s16, %s13_s16   ;;  %s1561_s15 = sphi %s1594_s15, %s1853_s15   ;;  %s1557_s14 = sphi %s1592_s14, %s1852_s14   ;;  %s1553_s13 = sphi %s1590_s13, %s1851_s13   ;;  %s1549_s12 = sphi %s1588_s12, %s1850_s12  }
   0x4   : > { %p26_p0 = scmp.ge.s32.totalorder %s25_s17, 4  ;;  %p49_p2 = scmp.eq.s32.totalorder %s1565_s16, 0 }
   0x5   : > { %s41_s19 = sadd.s32 1, %s1553_s13  ;;  %p1109_p5 = scmp.ge.s32.totalorder %s1565_s16, 4 }
   0x6   : > { %s1855_s17 = smov (%p26_p0, %s25_s17), 0  ;;  %p50_p3 = por %p49_p2, %p48_p1 }
   0x7   : > { %s37_s18 = ssub.s32 %s1561_s15, %s1855_s17  ;;  %164 = sbr.rel (%p1109_p5) target bundleno = 24 (0x18), region = 20 }
   0x8   : > { %p39_p4 = scmp.eq.s32.totalorder %s37_s18, 0 }
   0xa   : > { %s1623_s20 = scalar_select %p39_p4, %s1553_s13, %s41_s19  }
   0xc   : > { %167 = sbr.rel (!%p50_p3) target bundleno = 24 (0x18), region = 24  ;;  %s169_s21 = sand.u32 (%p50_p3), 1, %s1553_s13  }
   0xd   : > { %s1412_s22 = sshll.u32 (%p50_p3), %s1561_s15, 4  ;;  %s1110_s23 = sshll.u32 (%p50_p3), %s169_s21, 6 }
   0xe   : > { %s177_s26 = scalar_lea.vmem (%p50_p3), %s1846_s0, %s1412_s22  ;;  %s171_s27 = scalar_lea.vmem (%p50_p3), [#allocation3], %s1110_s23 }
   0xf   : > { %v190_v0 = vld [vmem:[%s177_s26] sm:$0xff] (%p50_p3)  ;;  %v192_v1 = vld [vmem:[%s177_s26 + $0x8] sm:$0xff] (%p50_p3) }
  0x10   : > { %v194_v2 = vld [vmem:[%s177_s26 + $0x40] sm:$0xff] (%p50_p3)  ;;  %191 = vst [vmem:[%s171_s27] sm:$0xff] (%p50_p3), %v190_v0  ;;  %v196_v3 = vld [vmem:[%s177_s26 + $0x48] sm:$0xff] (%p50_p3) }
  0x11   : > { %193 = vst [vmem:[%s171_s27 + $0x8] sm:$0xff] %v192_v1  ;;  %v198_v4 = vld [vmem:[%s177_s26 + $0x80] sm:$0xff]  ;;  %v200_v5 = vld [vmem:[%s177_s26 + $0x88] sm:$0xff] }
  0x12   : > { %195 = vst [vmem:[%s171_s27 + $0x10] sm:$0xff] %v194_v2  ;;  %v202_v6 = vld [vmem:[%s177_s26 + $0xc0] sm:$0xff]  ;;  %v204_v7 = vld [vmem:[%s177_s26 + $0xc8] sm:$0xff] }
  0x13   : > { %197 = vst [vmem:[%s171_s27 + $0x18] sm:$0xff] %v196_v3 }
  0x14   : > { %199 = vst [vmem:[%s171_s27 + $0x20] sm:$0xff] %v198_v4 }
  0x15   : > { %201 = vst [vmem:[%s171_s27 + $0x28] sm:$0xff] %v200_v5 }
  0x16   : > { %203 = vst [vmem:[%s171_s27 + $0x30] sm:$0xff] %v202_v6 }
  0x17   : > { %205 = vst [vmem:[%s171_s27 + $0x38] sm:$0xff] %v204_v7 }
  0x18 PF: > { %p1113_p6 = scmp.ge.s32.totalorder %s1565_s16, 1  ;;  %p225_p7 = scmp.lt.s32.totalorder %s1565_s16, 5 }
  0x1a   : > { %p226_p8 = pnand %p1113_p6, %p225_p7 }
  0x1b   : > { %s232_s28 = sand.u32 (!%p226_p8), 1, %s1549_s12   ;;  %s1115_s29 = sshll.u32 (!%p226_p8), %s1557_s14, 6 }
  0x1c   : > { %229 = sbr.rel (%p226_p8) target bundleno = 295 (0x127), region = 51  ;;  %s1114_s30 = sshll.u32 (!%p226_p8), %s232_s28, 6 }
  0x1d   : > { %p278_p9 = scmp.lt.s32.totalorder (!%p226_p8), %s1115_s29, 255  ;;  %s1640_s8 = scalar_lea.vmem (!%p226_p8), [#allocation3], %s1114_s30 }
  0x1e   : > { %p1118_p10 = scmp.ne.s32.totalorder (!%p226_p8), %s1557_s14, 0 }
  0x21   : > { %s1857_s29 = smov (!%p278_p9, %s1115_s29), 255  ;;  %308 = sbr.rel (%p1118_p10) target bundleno = 47 (0x2f), region = 59 }
  0x22   : > { %s1413_s4 = sshll.u32 %s1857_s29, 3 }
  0x23   : > { %s1638_s7 = scalar_lea.vmem %s1847_s1, %s1413_s4 }
  0x26   : > { %v1567_v8 = vmov 0.0  }
  0x27   : > { %309 = vst [vmem:[#allocation2 + $0x30] sm:$0xff] %v1567_v8 }
  0x28   : > { %310 = vst [vmem:[#allocation2] sm:$0xff] %v1567_v8 }
  0x29   : > { %311 = vst [vmem:[#allocation2 + $0x18] sm:$0xff] %v1567_v8 }
  0x2a   : > { %312 = vst [vmem:[#allocation2 + $0x10] sm:$0xff] %v1567_v8 }
  0x2b   : > { %313 = vst [vmem:[#allocation2 + $0x8] sm:$0xff] %v1567_v8 }
  0x2c   : > { %314 = vst [vmem:[#allocation2 + $0x20] sm:$0xff] %v1567_v8 }
  0x2d   : > { %315 = vst [vmem:[#allocation2 + $0x28] sm:$0xff] %v1567_v8 }
  0x2e   : > { %316 = vst [vmem:[#allocation2 + $0x38] sm:$0xff] %v1567_v8 }
  0x2f PF: > { %v1209_v9 = vld [vmem:[%s1638_s7 + $0x70] sm:$0xf]  ;;  %v1437_v10 = vld [vmem:[%s1638_s7 + $0x74] sm:$0xf0]  ;;  %v1201_v20 = vld [vmem:[%s1638_s7 + $0x60] sm:$0xf] }
  0x30   : > { %v1273_v11 = vld [vmem:[%s1638_s7 + $0xf0] sm:$0xf]  ;;  %v1210_v12 = vor.u32 %v1437_v10, %v1209_v9  ;;  %v1453_v13 = vld [vmem:[%s1638_s7 + $0xf4] sm:$0xf0]  ;;  %v1435_v22 = vld [vmem:[%s1638_s7 + $0x64] sm:$0xf0] }
  0x31   : > { %v1337_v14 = vld [vmem:[%s1638_s7 + $0x170] sm:$0xf]  ;;  %v1469_v15 = vld [vmem:[%s1638_s7 + $0x174] sm:$0xf0]  ;;  %v1274_v16 = vor.u32 %v1453_v13, %v1273_v11  ;;  %v1265_v23 = vld [vmem:[%s1638_s7 + $0xe0] sm:$0xf]  ;;  %v1202_v25 = vor.u32 %v1435_v22, %v1201_v20 }
  0x32   : > { %v1338_v17 = vor.u32 %v1469_v15, %v1337_v14  ;;  %v1401_v18 = vld [vmem:[%s1638_s7 + $0x1f0] sm:$0xf]  ;;  %v1485_v19 = vld [vmem:[%s1638_s7 + $0x1f4] sm:$0xf0]  ;;  %757 = vmatpush.bf16.msra.mxu0 %v1210_v12  ;;  %v1451_v24 = vld [vmem:[%s1638_s7 + $0xe4] sm:$0xf0] }
  0x33   : > { %v1402_v21 = vor.u32 %v1485_v19, %v1401_v18  ;;  %776 = vmatpush.bf16.msra.mxu1 %v1274_v16  ;;  %v1266_v26 = vor.u32 %v1451_v24, %v1265_v23  ;;  %v1329_v27 = vld [vmem:[%s1638_s7 + $0x160] sm:$0xf]  ;;  %v1467_v28 = vld [vmem:[%s1638_s7 + $0x164] sm:$0xf0]  ;;  %v1193_v32 = vld [vmem:[%s1638_s7 + $0x50] sm:$0xf] }
  0x34   : > { %795 = vmatpush.bf16.msra.mxu2 %v1338_v17  ;;  %v1393_v29 = vld [vmem:[%s1638_s7 + $0x1e0] sm:$0xf]  ;;  %v1330_v30 = vor.u32 %v1467_v28, %v1329_v27  ;;  %v1483_v31 = vld [vmem:[%s1638_s7 + $0x1e4] sm:$0xf0]  ;;  %v1433_v33 = vld [vmem:[%s1638_s7 + $0x54] sm:$0xf0] }
  0x35   : > { %814 = vmatpush.bf16.msra.mxu3 %v1402_v21  ;;  %v1394_v34 = vor.u32 %v1483_v31, %v1393_v29  ;;  %v1257_v35 = vld [vmem:[%s1638_s7 + $0xd0] sm:$0xf]  ;;  %v1449_v36 = vld [vmem:[%s1638_s7 + $0xd4] sm:$0xf0]  ;;  %v1194_v38 = vor.u32 %v1433_v33, %v1193_v32  ;;  %v1185_v44 = vld [vmem:[%s1638_s7 + $0x40] sm:$0xf] }
  0x36   : > { %v1321_v37 = vld [vmem:[%s1638_s7 + $0x150] sm:$0xf]  ;;  %758 = vmatpush.bf16.msra.mxu0 %v1202_v25  ;;  %v1465_v39 = vld [vmem:[%s1638_s7 + $0x154] sm:$0xf0]  ;;  %v1258_v42 = vor.u32 %v1449_v36, %v1257_v35  ;;  %v1431_v45 = vld [vmem:[%s1638_s7 + $0x44] sm:$0xf0] }
  0x37   : > { %v1385_v40 = vld [vmem:[%s1638_s7 + $0x1d0] sm:$0xf]  ;;  %v1481_v41 = vld [vmem:[%s1638_s7 + $0x1d4] sm:$0xf0]  ;;  %777 = vmatpush.bf16.msra.mxu1 %v1266_v26  ;;  %v1322_v43 = vor.u32 %v1465_v39, %v1321_v37  ;;  %v1249_v46 = vld [vmem:[%s1638_s7 + $0xc0] sm:$0xf]  ;;  %v1186_v53 = vor.u32 %v1431_v45, %v1185_v44 }
  0x38   : > { %796 = vmatpush.bf16.msra.mxu2 %v1330_v30  ;;  %v1386_v47 = vor.u32 %v1481_v41, %v1385_v40  ;;  %v1447_v48 = vld [vmem:[%s1638_s7 + $0xc4] sm:$0xf0]  ;;  %v1313_v49 = vld [vmem:[%s1638_s7 + $0x140] sm:$0xf]  ;;  %v1177_v56 = vld [vmem:[%s1638_s7 + $0x30] sm:$0xf] }
  0x39   : > { %815 = vmatpush.bf16.msra.mxu3 %v1394_v34  ;;  %v1463_v50 = vld [vmem:[%s1638_s7 + $0x144] sm:$0xf0]  ;;  %v1377_v51 = vld [vmem:[%s1638_s7 + $0x1c0] sm:$0xf]  ;;  %v1250_v54 = vor.u32 %v1447_v48, %v1249_v46  ;;  %v1429_v57 = vld [vmem:[%s1638_s7 + $0x34] sm:$0xf0] }
  0x3a   : > { %v1479_v52 = vld [vmem:[%s1638_s7 + $0x1c4] sm:$0xf0]  ;;  %759 = vmatpush.bf16.msra.mxu0 %v1194_v38  ;;  %v1314_v55 = vor.u32 %v1463_v50, %v1313_v49  ;;  %v1241_v58 = vld [vmem:[%s1638_s7 + $0xb0] sm:$0xf]  ;;  %v1445_v60 = vld [vmem:[%s1638_s7 + $0xb4] sm:$0xf0]  ;;  %v1178_v1 = vor.u32 %v1429_v57, %v1177_v56 }
  0x3b   : > { %778 = vmatpush.bf16.msra.mxu1 %v1258_v42  ;;  %v1378_v59 = vor.u32 %v1479_v52, %v1377_v51  ;;  %v1305_v61 = vld [vmem:[%s1638_s7 + $0x130] sm:$0xf]  ;;  %v1461_v62 = vld [vmem:[%s1638_s7 + $0x134] sm:$0xf0]  ;;  %v1242_v2 = vor.u32 %v1445_v60, %v1241_v58  ;;  %v1169_v4 = vld [vmem:[%s1638_s7 + $0x20] sm:$0xf] }
  0x3c   : > { %797 = vmatpush.bf16.msra.mxu2 %v1322_v43  ;;  %v1369_v63 = vld [vmem:[%s1638_s7 + $0x1b0] sm:$0xf]  ;;  %v1477_v0 = vld [vmem:[%s1638_s7 + $0x1b4] sm:$0xf0]  ;;  %v1306_v3 = vor.u32 %v1461_v62, %v1305_v61  ;;  %v1427_v5 = vld [vmem:[%s1638_s7 + $0x24] sm:$0xf0] }
  0x3d   : > { %816 = vmatpush.bf16.msra.mxu3 %v1386_v47  ;;  %v1233_v6 = vld [vmem:[%s1638_s7 + $0xa0] sm:$0xf]  ;;  %v1370_v7 = vor.u32 %v1477_v0, %v1369_v63  ;;  %v1443_v8 = vld [vmem:[%s1638_s7 + $0xa4] sm:$0xf0]  ;;  %v1170_v13 = vor.u32 %v1427_v5, %v1169_v4  ;;  %v1161_v16 = vld [vmem:[%s1638_s7 + $0x10] sm:$0xf] }
  0x3e   : > { %760 = vmatpush.bf16.msra.mxu0 %v1186_v53  ;;  %v1297_v9 = vld [vmem:[%s1638_s7 + $0x120] sm:$0xf]  ;;  %v1459_v10 = vld [vmem:[%s1638_s7 + $0x124] sm:$0xf0]  ;;  %v1234_v14 = vor.u32 %v1443_v8, %v1233_v6  ;;  %v1425_v17 = vld [vmem:[%s1638_s7 + $0x14] sm:$0xf0] }
  0x3f   : > { %779 = vmatpush.bf16.msra.mxu1 %v1250_v54  ;;  %v1361_v11 = vld [vmem:[%s1638_s7 + $0x1a0] sm:$0xf]  ;;  %v1475_v12 = vld [vmem:[%s1638_s7 + $0x1a4] sm:$0xf0]  ;;  %v1298_v15 = vor.u32 %v1459_v10, %v1297_v9  ;;  %v1225_v18 = vld [vmem:[%s1638_s7 + $0x90] sm:$0xf]  ;;  %v1162_v26 = vor.u32 %v1425_v17, %v1161_v16 }
  0x40   : > { %798 = vmatpush.bf16.msra.mxu2 %v1314_v55  ;;  %v1362_v19 = vor.u32 %v1475_v12, %v1361_v11  ;;  %v1441_v20 = vld [vmem:[%s1638_s7 + $0x94] sm:$0xf0]  ;;  %v1289_v21 = vld [vmem:[%s1638_s7 + $0x110] sm:$0xf]  ;;  %v1153_v25 = vld [vmem:[%s1638_s7] sm:$0xf] }
  0x41   : > { %817 = vmatpush.bf16.msra.mxu3 %v1378_v59  ;;  %v1457_v22 = vld [vmem:[%s1638_s7 + $0x114] sm:$0xf0]  ;;  %v1353_v23 = vld [vmem:[%s1638_s7 + $0x190] sm:$0xf]  ;;  %v1423_v27 = vld [vmem:[%s1638_s7 + $0x4] sm:$0xf0]  ;;  %v1226_v30 = vor.u32 %v1441_v20, %v1225_v18 }
  0x42   : > { %761 = vmatpush.bf16.msra.mxu0 %v1178_v1  ;;  %v1473_v24 = vld [vmem:[%s1638_s7 + $0x194] sm:$0xf0]  ;;  %v1217_v28 = vld [vmem:[%s1638_s7 + $0x80] sm:$0xf]  ;;  %v1439_v29 = vld [vmem:[%s1638_s7 + $0x84] sm:$0xf0]  ;;  %v1290_v31 = vor.u32 %v1457_v22, %v1289_v21  ;;  %v1154_v43 = vor.u32 %v1423_v27, %v1153_v25 }
  0x43   : > { %780 = vmatpush.bf16.msra.mxu1 %v1242_v2  ;;  %v1281_v32 = vld [vmem:[%s1638_s7 + $0x100] sm:$0xf]  ;;  %v1455_v33 = vld [vmem:[%s1638_s7 + $0x104] sm:$0xf0]  ;;  %v1354_v35 = vor.u32 %v1473_v24, %v1353_v23  ;;  %v1416_v38 = vld [vmem:[%s1640_s8 + $0xc] sm:$0xf0]  ;;  %v1218_v47 = vor.u32 %v1439_v29, %v1217_v28 }
  0x44   : > { %799 = vmatpush.bf16.msra.mxu2 %v1306_v3  ;;  %v1345_v34 = vld [vmem:[%s1638_s7 + $0x180] sm:$0xf]  ;;  %v1471_v36 = vld [vmem:[%s1638_s7 + $0x184] sm:$0xf0]  ;;  %v1414_v39 = vld [vmem:[%s1640_s8 + $0x4] sm:$0xf]  ;;  %v1282_v48 = vor.u32 %v1455_v33, %v1281_v32 }
  0x45   : > { %818 = vmatpush.bf16.msra.mxu3 %v1370_v7  ;;  %v1121_v37 = vld [vmem:[%s1640_s8] sm:$0xf]  ;;  %v1123_v40 = vld [vmem:[%s1640_s8 + $0x10] sm:$0xf0]  ;;  %v1339_v42 = vld [vmem:[%s1638_s7 + $0x178] sm:$0xf0]  ;;  %v1346_v52 = vor.u32 %v1471_v36, %v1345_v34 }
  0x46   : > { %762 = vmatpush.bf16.msra.mxu0 %v1170_v13  ;;  %v1468_v41 = vld [vmem:[%s1638_s7 + $0x174] sm:$0xf]  ;;  %v1129_v44 = vld [vmem:[%s1640_s8 + $0x8] sm:$0xf]  ;;  %v1275_v46 = vld [vmem:[%s1638_s7 + $0xf8] sm:$0xf0]  ;;  %v1722_v57 = vor.u32 %v1416_v38, %v1121_v37  ;;  %v1727_v62 = vor.u32 %v1414_v39, %v1123_v40 }
  0x47   : > { %781 = vmatpush.bf16.msra.mxu1 %v1234_v14  ;;  %v1452_v45 = vld [vmem:[%s1638_s7 + $0xf4] sm:$0xf]  ;;  %v1417_v49 = vld [vmem:[%s1640_s8 + $0x14] sm:$0xf0]  ;;  %v1415_v50 = vld [vmem:[%s1640_s8 + $0xc] sm:$0xf]  ;;  %v1342_v53 = vor.u32 %v1468_v41, %v1339_v42 }
  0x48   : > { %800 = vmatpush.bf16.msra.mxu2 %v1298_v15  ;;  %v1131_v51 = vld [vmem:[%s1640_s8 + $0x18] sm:$0xf0]  ;;  %v1436_v54 = vld [vmem:[%s1638_s7 + $0x74] sm:$0xf]  ;;  %v1278_v58 = vor.u32 %v1452_v45, %v1275_v46  ;;  %v1466_v60 = vld [vmem:[%s1638_s7 + $0x164] sm:$0xf]  ;;  %v1729_v63 = vor.u32 %v1417_v49, %v1129_v44 }
  0x49   : > { %819 = vmatpush.bf16.msra.mxu3 %v1362_v19  ;;  %v1211_v55 = vld [vmem:[%s1638_s7 + $0x78] sm:$0xf0]  ;;  %v1484_v56 = vld [vmem:[%s1638_s7 + $0x1f4] sm:$0xf]  ;;  %v1331_v61 = vld [vmem:[%s1638_s7 + $0x168] sm:$0xf0]  ;;  %v1733_v2 = vor.u32 %v1415_v50, %v1131_v51 }
  0x4a   : > { %763 = vmatpush.bf16.msra.mxu0 %v1162_v26  ;;  %v1403_v59 = vld [vmem:[%s1638_s7 + $0x1f8] sm:$0xf0]  ;;  %v1450_v0 = vld [vmem:[%s1638_s7 + $0xe4] sm:$0xf]  ;;  %v1267_v1 = vld [vmem:[%s1638_s7 + $0xe8] sm:$0xf0]  ;;  %v1214_v3 = vor.u32 %v1436_v54, %v1211_v55  ;;  %v1334_v5 = vor.u32 %v1466_v60, %v1331_v61 }
  0x4b   : > { %782 = vmatpush.bf16.msra.mxu1 %v1226_v30  ;;  %v1406_v4 = vor.u32 %v1484_v56, %v1403_v59  ;;  %v1434_v6 = vld [vmem:[%s1638_s7 + $0x64] sm:$0xf]  ;;  %v1203_v7 = vld [vmem:[%s1638_s7 + $0x68] sm:$0xf0]  ;;  %v1270_v9 = vor.u32 %v1450_v0, %v1267_v1  ;;  %v1464_v11 = vld [vmem:[%s1638_s7 + $0x154] sm:$0xf] }
  0x4c   : > { %801 = vmatpush.bf16.msra.mxu2 %v1290_v31  ;;  %v1482_v8 = vld [vmem:[%s1638_s7 + $0x1e4] sm:$0xf]  ;;  %v1395_v10 = vld [vmem:[%s1638_s7 + $0x1e8] sm:$0xf0]  ;;  %v1323_v12 = vld [vmem:[%s1638_s7 + $0x158] sm:$0xf0]  ;;  %v1206_v15 = vor.u32 %v1434_v6, %v1203_v7 }
  0x4d   : > { %820 = vmatpush.bf16.msra.mxu3 %v1354_v35  ;;  %v1448_v13 = vld [vmem:[%s1638_s7 + $0xd4] sm:$0xf]  ;;  %v1259_v14 = vld [vmem:[%s1638_s7 + $0xd8] sm:$0xf0]  ;;  %v1398_v16 = vor.u32 %v1482_v8, %v1395_v10  ;;  %v1326_v17 = vor.u32 %v1464_v11, %v1323_v12  ;;  %v1462_v23 = vld [vmem:[%s1638_s7 + $0x144] sm:$0xf] }
  0x4e   : > { %764 = vmatpush.bf16.msra.mxu0 %v1154_v43  ;;  %v1432_v18 = vld [vmem:[%s1638_s7 + $0x54] sm:$0xf]  ;;  %v1195_v19 = vld [vmem:[%s1638_s7 + $0x58] sm:$0xf0]  ;;  %v1262_v21 = vor.u32 %v1448_v13, %v1259_v14  ;;  %v1315_v24 = vld [vmem:[%s1638_s7 + $0x148] sm:$0xf0] }
  0x4f   : > { %783 = vmatpush.bf16.msra.mxu1 %v1218_v47  ;;  %v1480_v20 = vld [vmem:[%s1638_s7 + $0x1d4] sm:$0xf]  ;;  %v1387_v22 = vld [vmem:[%s1638_s7 + $0x1d8] sm:$0xf0]  ;;  %v1446_v25 = vld [vmem:[%s1638_s7 + $0xc4] sm:$0xf]  ;;  %v1198_v27 = vor.u32 %v1432_v18, %v1195_v19  ;;  %v1318_v32 = vor.u32 %v1462_v23, %v1315_v24 }
  0x50   : > { %802 = vmatpush.bf16.msra.mxu2 %v1282_v48  ;;  %v1251_v26 = vld [vmem:[%s1638_s7 + $0xc8] sm:$0xf0]  ;;  %v1430_v28 = vld [vmem:[%s1638_s7 + $0x44] sm:$0xf]  ;;  %v1390_v31 = vor.u32 %v1480_v20, %v1387_v22  ;;  %v1137_v34 = vld [vmem:[%s1640_s8 + $0x20] sm:$0xf] }
  0x51   : > { %821 = vmatpush.bf16.msra.mxu3 %v1346_v52  ;;  %765 = vmatmul.bf16.vlgmr.msra.gmra.mxu0 %v1722_v57  ;;  %v1187_v29 = vld [vmem:[%s1638_s7 + $0x48] sm:$0xf0]  ;;  %v1478_v30 = vld [vmem:[%s1638_s7 + $0x1c4] sm:$0xf]  ;;  %v1420_v35 = vld [vmem:[%s1640_s8 + $0x2c] sm:$0xf0]  ;;  %v1254_v36 = vor.u32 %v1446_v25, %v1251_v26 }
  0x52   : > { %784 = vmatmul.bf16.vlgmr.msra.gmra.mxu1 %v1727_v62  ;;  %833 = vmatpush.bf16.msrb.mxu0 %v1214_v3  ;;  %v1379_v33 = vld [vmem:[%s1638_s7 + $0x1c8] sm:$0xf0]  ;;  %v1418_v37 = vld [vmem:[%s1640_s8 + $0x24] sm:$0xf]  ;;  %v1139_v38 = vld [vmem:[%s1640_s8 + $0x30] sm:$0xf0]  ;;  %v1190_v44 = vor.u32 %v1430_v28, %v1187_v29 }
  0x53   : > { %852 = vmatpush.bf16.msrb.mxu1 %v1278_v58  ;;  %803 = vmatmul.bf16.vlgmr.msra.gmra.mxu2 %v1729_v63  ;;  %v1460_v39 = vld [vmem:[%s1638_s7 + $0x134] sm:$0xf]  ;;  %v1307_v40 = vld [vmem:[%s1638_s7 + $0x138] sm:$0xf0]  ;;  %v1145_v41 = vld [vmem:[%s1640_s8 + $0x28] sm:$0xf]  ;;  %v1382_v48 = vor.u32 %v1478_v30, %v1379_v33  ;;  %v1779_v59 = vor.u32 %v1418_v37, %v1139_v38 }
  0x54   : > { %871 = vmatpush.bf16.msrb.mxu2 %v1342_v53  ;;  %822 = vmatmul.bf16.vlgmr.msra.gmra.mxu3 %v1733_v2  ;;  %v1444_v42 = vld [vmem:[%s1638_s7 + $0xb4] sm:$0xf]  ;;  %v1243_v43 = vld [vmem:[%s1638_s7 + $0xb8] sm:$0xf0]  ;;  %v1421_v45 = vld [vmem:[%s1640_s8 + $0x34] sm:$0xf0]  ;;  %v1310_v49 = vor.u32 %v1460_v39, %v1307_v40  ;;  %v1774_v53 = vor.u32 %v1420_v35, %v1137_v34 }
  0x55   : > { %890 = vmatpush.bf16.msrb.mxu3 %v1406_v4  ;;  %v1419_v46 = vld [vmem:[%s1640_s8 + $0x2c] sm:$0xf]  ;;  %v1147_v47 = vld [vmem:[%s1640_s8 + $0x38] sm:$0xf0]  ;;  %v1428_v50 = vld [vmem:[%s1638_s7 + $0x34] sm:$0xf]  ;;  %v1246_v54 = vor.u32 %v1444_v42, %v1243_v43  ;;  %v1781_v60 = vor.u32 %v1421_v45, %v1145_v41 }
  0x56   : > { %834 = vmatpush.bf16.msrb.mxu0 %v1206_v15  ;;  %v1179_v51 = vld [vmem:[%s1638_s7 + $0x38] sm:$0xf0]  ;;  %v1476_v52 = vld [vmem:[%s1638_s7 + $0x1b4] sm:$0xf]  ;;  %v1458_v56 = vld [vmem:[%s1638_s7 + $0x124] sm:$0xf]  ;;  %v1150_v1 = vor.u32 %v1419_v46, %v1147_v47 }
  0x57   : > { %853 = vmatpush.bf16.msrb.mxu1 %v1270_v9  ;;  %v1371_v55 = vld [vmem:[%s1638_s7 + $0x1b8] sm:$0xf0]  ;;  %v1299_v58 = vld [vmem:[%s1638_s7 + $0x128] sm:$0xf0]  ;;  %v1442_v61 = vld [vmem:[%s1638_s7 + $0xa4] sm:$0xf]  ;;  %v1182_v3 = vor.u32 %v1428_v50, %v1179_v51 }
  0x58   : > { %872 = vmatpush.bf16.msrb.mxu2 %v1334_v5  ;;  %v1235_v0 = vld [vmem:[%s1638_s7 + $0xa8] sm:$0xf0]  ;;  %v1374_v4 = vor.u32 %v1476_v52, %v1371_v55  ;;  %v1302_v5 = vor.u32 %v1458_v56, %v1299_v58  ;;  %v1426_v6 = vld [vmem:[%s1638_s7 + $0x24] sm:$0xf]  ;;  %v1456_v11 = vld [vmem:[%s1638_s7 + $0x114] sm:$0xf] }
  0x59   : > { %891 = vmatpush.bf16.msrb.mxu3 %v1398_v16  ;;  %v1171_v7 = vld [vmem:[%s1638_s7 + $0x28] sm:$0xf0]  ;;  %v1474_v8 = vld [vmem:[%s1638_s7 + $0x1a4] sm:$0xf]  ;;  %v1238_v9 = vor.u32 %v1442_v61, %v1235_v0  ;;  %v1291_v12 = vld [vmem:[%s1638_s7 + $0x118] sm:$0xf0] }
  0x5a   : > { %835 = vmatpush.bf16.msrb.mxu0 %v1198_v27  ;;  %v1363_v10 = vld [vmem:[%s1638_s7 + $0x1a8] sm:$0xf0]  ;;  %v1440_v13 = vld [vmem:[%s1638_s7 + $0x94] sm:$0xf]  ;;  %v1227_v14 = vld [vmem:[%s1638_s7 + $0x98] sm:$0xf0]  ;;  %v1174_v15 = vor.u32 %v1426_v6, %v1171_v7 }
  0x5b   : > { %854 = vmatpush.bf16.msrb.mxu1 %v1262_v21  ;;  %v1366_v16 = vor.u32 %v1474_v8, %v1363_v10  ;;  %v1424_v18 = vld [vmem:[%s1638_s7 + $0x14] sm:$0xf]  ;;  %v1163_v19 = vld [vmem:[%s1638_s7 + $0x18] sm:$0xf0]  ;;  %v1230_v21 = vor.u32 %v1440_v13, %v1227_v14  ;;  %v1454_v23 = vld [vmem:[%s1638_s7 + $0x104] sm:$0xf] }
  0x5c   : > { %873 = vmatpush.bf16.msrb.mxu2 %v1326_v17  ;;  %v1294_v17 = vor.u32 %v1456_v11, %v1291_v12  ;;  %v1472_v20 = vld [vmem:[%s1638_s7 + $0x194] sm:$0xf]  ;;  %v1355_v22 = vld [vmem:[%s1638_s7 + $0x198] sm:$0xf0]  ;;  %v1283_v24 = vld [vmem:[%s1638_s7 + $0x108] sm:$0xf0]  ;;  %v1166_v27 = vor.u32 %v1424_v18, %v1163_v19 }
  0x5d   : > { %892 = vmatpush.bf16.msrb.mxu3 %v1390_v31  ;;  %v1438_v25 = vld [vmem:[%s1638_s7 + $0x84] sm:$0xf]  ;;  %v1219_v26 = vld [vmem:[%s1638_s7 + $0x88] sm:$0xf0]  ;;  %v1358_v28 = vor.u32 %v1472_v20, %v1355_v22  ;;  %v1286_v29 = vor.u32 %v1454_v23, %v1283_v24  ;;  %v317_v43 = vld [vmem:[#allocation2 + $0x30] sm:$0xff]  ;;  %p1407_p11 = scmp.ne.s32.totalorder %s1557_s14, 3 }
  0x5e   : > { %836 = vmatpush.bf16.msrb.mxu0 %v1190_v44  ;;  %v1422_v30 = vld [vmem:[%s1638_s7 + $0x4] sm:$0xf]  ;;  %v1155_v31 = vld [vmem:[%s1638_s7 + $0x8] sm:$0xf0]  ;;  %v320_v24 = vld [vmem:[#allocation2 + $0x10] sm:$0xff] }
  0x5f   : > { %855 = vmatpush.bf16.msrb.mxu1 %v1254_v36  ;;  %v1470_v33 = vld [vmem:[%s1638_s7 + $0x184] sm:$0xf]  ;;  %v1347_v34 = vld [vmem:[%s1638_s7 + $0x188] sm:$0xf0]  ;;  %v1158_v35 = vor.u32 %v1422_v30, %v1155_v31 }
  0x60   : > { %874 = vmatpush.bf16.msrb.mxu2 %v1318_v32  ;;  %v1222_v32 = vor.u32 %v1438_v25, %v1219_v26  ;;  %v1350_v36 = vor.u32 %v1470_v33, %v1347_v34  ;;  %v323_v6 = vld [vmem:[#allocation2 + $0x28] sm:$0xff]  ;;  %v322_v33 = vld [vmem:[#allocation2 + $0x20] sm:$0xff] }
  0x61   : > { %893 = vmatpush.bf16.msrb.mxu3 %v1382_v48  ;;  %770 = vmatmul.bf16.gmra.mxu0 %v1774_v53 }
  0x62   : > { %789 = vmatmul.bf16.gmra.mxu1 %v1779_v59  ;;  %837 = vmatpush.bf16.msrb.mxu0 %v1182_v3 }
  0x63   : > { %856 = vmatpush.bf16.msrb.mxu1 %v1246_v54  ;;  %808 = vmatmul.bf16.gmra.mxu2 %v1781_v60 }
  0x64   : > { %875 = vmatpush.bf16.msrb.mxu2 %v1310_v49  ;;  %827 = vmatmul.bf16.gmra.mxu3 %v1150_v1  ;;  %v319_v49 = vld [vmem:[#allocation2 + $0x18] sm:$0xff] }
  0x65   : > { %894 = vmatpush.bf16.msrb.mxu3 %v1374_v4 }
  0x66   : > { %838 = vmatpush.bf16.msrb.mxu0 %v1174_v15 }
  0x67   : > { %857 = vmatpush.bf16.msrb.mxu1 %v1238_v9 }
  0x68   : > { %876 = vmatpush.bf16.msrb.mxu2 %v1302_v5 }
  0x69   : > { %895 = vmatpush.bf16.msrb.mxu3 %v1366_v16 }
  0x6a   : > { %839 = vmatpush.bf16.msrb.mxu0 %v1166_v27 }
  0x6b   : > { %858 = vmatpush.bf16.msrb.mxu1 %v1230_v21 }
  0x6c   : > { %877 = vmatpush.bf16.msrb.mxu2 %v1294_v17  ;;  %v318_v17 = vld [vmem:[#allocation2] sm:$0xff] }
  0x6d   : > { %896 = vmatpush.bf16.msrb.mxu3 %v1358_v28 }
  0x6e   : > { %840 = vmatpush.bf16.msrb.mxu0 %v1158_v35 }
  0x6f   : > { %859 = vmatpush.bf16.msrb.mxu1 %v1222_v32 }
  0x70   : > { %878 = vmatpush.bf16.msrb.mxu2 %v1286_v29 }
  0x71   : > { %897 = vmatpush.bf16.msrb.mxu3 %v1350_v36  ;;  %841 = vmatmul.bf16.vlgmr.msrb.gmra.mxu0 %v1722_v57 }
  0x72   : > { %860 = vmatmul.bf16.vlgmr.msrb.gmra.mxu1 %v1727_v62 }
  0x73   : > { %879 = vmatmul.bf16.vlgmr.msrb.gmra.mxu2 %v1729_v63 }
  0x74   : > { %898 = vmatmul.bf16.vlgmr.msrb.gmra.mxu3 %v1733_v2 }
  0x81   : > { %846 = vmatmul.bf16.gmra.mxu0 %v1774_v53 }
  0x82   : > { %865 = vmatmul.bf16.gmra.mxu1 %v1779_v59  ;;  %v321_v59 = vld [vmem:[#allocation2 + $0x8] sm:$0xff] }
  0x83   : > { %884 = vmatmul.bf16.gmra.mxu2 %v1781_v60 }
  0x84   : > { %903 = vmatmul.bf16.gmra.mxu3 %v1150_v1 }
  0xce   : > { %v766_v37 = vpop.f32.mrf.mxu0 }
  0xcf   : > { %v785_v38 = vpop.f32.mrf.mxu1 }
  0xd0   : > { %v786_v39 = vadd.f32 %v785_v38, %v766_v37 }
  0xd6   : > { %v804_v40 = vpop.f32.mrf.mxu2  ;;  %v768_v57 = vpop.f32.mrf.mxu0 }
  0xd7   : > { %v805_v41 = vadd.f32 %v804_v40, %v786_v39  ;;  %v823_v42 = vpop.f32.mrf.mxu3  ;;  %v787_v62 = vpop.f32.mrf.mxu1 }
  0xd8   : > { %v788_v2 = vadd.f32 %v787_v62, %v768_v57 }
  0xd9   : > { %v824_v44 = vadd.f32 %v823_v42, %v805_v41  ;;  %v324_v41 = vld [vmem:[#allocation2 + $0x38] sm:$0xff] }
  0xdb   : > { %v909_v63 = vadd.f32 %v824_v44, %v317_v43 }
  0xdd   : > { %917 = vst [vmem:[#allocation2 + $0x30] sm:$0xff] %v909_v63 }
  0xde   : > { %v806_v45 = vpop.f32.mrf.mxu2  ;;  %v771_v48 = vpop.f32.mrf.mxu0 }
  0xdf   : > { %v807_v46 = vadd.f32 %v806_v45, %v788_v2  ;;  %v825_v47 = vpop.f32.mrf.mxu3  ;;  %v790_v50 = vpop.f32.mrf.mxu1 }
  0xe0   : > { %v791_v53 = vadd.f32 %v790_v50, %v771_v48 }
  0xe1   : > { %v826_v51 = vadd.f32 %v825_v47, %v807_v46 }
  0xe3   : > { %v911_v52 = vadd.f32 %v826_v51, %v319_v49 }
  0xe5   : > { %919 = vst [vmem:[#allocation2 + $0x18] sm:$0xff] %v911_v52 }
  0xe6   : > { %v809_v54 = vpop.f32.mrf.mxu2  ;;  %v773_v58 = vpop.f32.mrf.mxu0 }
  0xe7   : > { %v810_v55 = vadd.f32 %v809_v54, %v791_v53  ;;  %v828_v56 = vpop.f32.mrf.mxu3  ;;  %v792_v60 = vpop.f32.mrf.mxu1 }
  0xe8   : > { %v793_v1 = vadd.f32 %v792_v60, %v773_v58 }
  0xe9   : > { %v829_v61 = vadd.f32 %v828_v56, %v810_v55 }
  0xeb   : > { %v913_v0 = vadd.f32 %v829_v61, %v321_v59 }
  0xed   : > { %921 = vst [vmem:[#allocation2 + $0x8] sm:$0xff] %v913_v0 }
  0xee   : > { %v811_v3 = vpop.f32.mrf.mxu2  ;;  %v842_v7 = vpop.f32.mrf.mxu0 }
  0xef   : > { %v812_v4 = vadd.f32 %v811_v3, %v793_v1  ;;  %v830_v5 = vpop.f32.mrf.mxu3  ;;  %v861_v8 = vpop.f32.mrf.mxu1 }
  0xf0   : > { %v862_v11 = vadd.f32 %v861_v8, %v842_v7 }
  0xf1   : > { %v831_v9 = vadd.f32 %v830_v5, %v812_v4 }
  0xf3   : > { %v915_v10 = vadd.f32 %v831_v9, %v323_v6 }
  0xf5   : > { %923 = vst [vmem:[#allocation2 + $0x28] sm:$0xff] %v915_v10 }
  0xf6   : > { %v880_v12 = vpop.f32.mrf.mxu2  ;;  %v844_v15 = vpop.f32.mrf.mxu0 }
  0xf7   : > { %v899_v13 = vpop.f32.mrf.mxu3  ;;  %v881_v14 = vadd.f32 %v880_v12, %v862_v11  ;;  %v863_v16 = vpop.f32.mrf.mxu1 }
  0xf8   : > { %v864_v20 = vadd.f32 %v863_v16, %v844_v15 }
  0xf9   : > { %v900_v18 = vadd.f32 %v899_v13, %v881_v14 }
  0xfb   : > { %v910_v19 = vadd.f32 %v900_v18, %v318_v17 }
  0xfd   : > { %918 = vst [vmem:[#allocation2] sm:$0xff] %v910_v19 }
  0xfe   : > { %v882_v21 = vpop.f32.mrf.mxu2  ;;  %v847_v25 = vpop.f32.mrf.mxu0 }
  0xff   : > { %v901_v22 = vpop.f32.mrf.mxu3  ;;  %v883_v23 = vadd.f32 %v882_v21, %v864_v20  ;;  %v866_v26 = vpop.f32.mrf.mxu1 }
 0x100   : > { %v867_v29 = vadd.f32 %v866_v26, %v847_v25 }
 0x101   : > { %v902_v27 = vadd.f32 %v901_v22, %v883_v23 }
 0x103   : > { %v912_v28 = vadd.f32 %v902_v27, %v320_v24 }
 0x105   : > { %920 = vst [vmem:[#allocation2 + $0x10] sm:$0xff] %v912_v28 }
 0x106   : > { %v885_v30 = vpop.f32.mrf.mxu2  ;;  %v849_v35 = vpop.f32.mrf.mxu0 }
 0x107   : > { %v904_v31 = vpop.f32.mrf.mxu3  ;;  %v886_v32 = vadd.f32 %v885_v30, %v867_v29  ;;  %v868_v36 = vpop.f32.mrf.mxu1 }
 0x108   : > { %v869_v38 = vadd.f32 %v868_v36, %v849_v35 }
 0x109   : > { %v905_v34 = vadd.f32 %v904_v31, %v886_v32 }
 0x10b   : > { %v914_v37 = vadd.f32 %v905_v34, %v322_v33 }
 0x10d   : > { %922 = vst [vmem:[#allocation2 + $0x20] sm:$0xff] %v914_v37 }
 0x10e   : > { %v887_v39 = vpop.f32.mrf.mxu2 }
 0x10f   : > { %v888_v40 = vadd.f32 %v887_v39, %v869_v38  ;;  %v906_v42 = vpop.f32.mrf.mxu3 }
 0x111   : > { %v907_v57 = vadd.f32 %v906_v42, %v888_v40  ;;  %928 = sbr.rel (%p1407_p11) target bundleno = 295 (0x127), region = 63 }
 0x113   : > { %v916_v43 = vadd.f32 %v907_v57, %v324_v41 }
 0x115   : > { %924 = vst [vmem:[#allocation2 + $0x38] sm:$0xff] %v916_v43 }
 0x116   : > { %v929_v62 = vld [vmem:[#allocation2 + $0x30] sm:$0xff]  ;;  %v930_v44 = vld [vmem:[#allocation2] sm:$0xff]  ;;  %v931_v46 = vld [vmem:[#allocation2 + $0x18] sm:$0xff] }
 0x117   : > { %v937_v63 = vld [vmem:[%s1848_s2] sm:$0x3]  ;;  %v932_v47 = vld [vmem:[#allocation2 + $0x10] sm:$0xff]  ;;  %v933_v48 = vld [vmem:[#allocation2 + $0x8] sm:$0xff] }
 0x118   : > { %v939_v2 = vperm.slane %v937_v63, 0  ;;  %v940_v45 = vperm.slane %v937_v63, 1  ;;  %v934_v49 = vld [vmem:[#allocation2 + $0x20] sm:$0xff]  ;;  %v935_v50 = vld [vmem:[#allocation2 + $0x28] sm:$0xff] }
 0x11a   : > { %v943_v52 = vadd.f32 %v939_v2, %v929_v62  ;;  %v944_v53 = vadd.f32 %v940_v45, %v930_v44  ;;  %v945_v54 = vadd.f32 %v939_v2, %v931_v46  ;;  %v946_v55 = vadd.f32 %v940_v45, %v932_v47 }
 0x11b   : > { %v947_v56 = vadd.f32 %v939_v2, %v933_v48  ;;  %v948_v58 = vadd.f32 %v940_v45, %v934_v49  ;;  %v949_v59 = vadd.f32 %v939_v2, %v935_v50 }
 0x11c   : > { %v936_v51 = vld [vmem:[#allocation2 + $0x38] sm:$0xff]  ;;  %vm951_vm0 = vcmp.gt.f32.partialorder %v943_v52, 0.0  ;;  %vm952_vm1 = vcmp.gt.f32.partialorder %v944_v53, 0.0  ;;  %v959_v61 = vmul.f32 0.2, %v943_v52  ;;  %vm953_vm2 = vcmp.gt.f32.partialorder %v945_v54, 0.0 }
 0x11d   : > { %v950_v60 = vadd.f32 %v940_v45, %v936_v51  ;;  %v960_v0 = vmul.f32 0.2, %v944_v53  ;;  %vm954_vm3 = vcmp.gt.f32.partialorder %v946_v55, 0.0  ;;  %v961_v1 = vmul.f32 0.2, %v945_v54 }
 0x11e   : > { %v962_v3 = vmul.f32 0.2, %v946_v55  ;;  %v967_v4 = vsel %vm951_vm0, %v943_v52, %v959_v61  ;;  %vm955_vm4 = vcmp.gt.f32.partialorder %v947_v56, 0.0  ;;  %vm956_vm5 = vcmp.gt.f32.partialorder %v948_v58, 0.0 }
 0x11f   : > { %v968_v5 = vsel %vm952_vm1, %v944_v53, %v960_v0  ;;  %v969_v7 = vsel %vm953_vm2, %v945_v54, %v961_v1  ;;  %v963_v9 = vmul.f32 0.2, %v947_v56  ;;  %v964_v11 = vmul.f32 0.2, %v948_v58 }
 0x120   : > { %v975_v6 = vpack.c.bf16 %v968_v5, %v967_v4  ;;  %v970_v8 = vsel %vm954_vm3, %v946_v55, %v962_v3  ;;  %vm957_vm6 = vcmp.gt.f32.partialorder %v949_v59, 0.0  ;;  %vm958_vm7 = vcmp.gt.f32.partialorder %v950_v60, 0.0 }
 0x121   : > { %v976_v10 = vpack.c.bf16 %v970_v8, %v969_v7  ;;  %v971_v12 = vsel %vm955_vm4, %v947_v56, %v963_v9  ;;  %v965_v13 = vmul.f32 0.2, %v949_v59  ;;  %v966_v14 = vmul.f32 0.2, %v950_v60 }
 0x122   : > { %979 = vst [vmem:[%s1849_s3] sm:$0xff] %v975_v6  ;;  %v972_v15 = vsel %vm956_vm5, %v948_v58, %v964_v11 }
 0x123   : > { %980 = vst [vmem:[%s1849_s3 + $0x8] sm:$0xff] %v976_v10  ;;  %v977_v16 = vpack.c.bf16 %v972_v15, %v971_v12  ;;  %v973_v17 = vsel %vm957_vm6, %v949_v59, %v965_v13  ;;  %v974_v18 = vsel %vm958_vm7, %v950_v60, %v966_v14 }
 0x124   : > { %v978_v19 = vpack.c.bf16 %v974_v18, %v973_v17 }
 0x125   : > { %981 = vst [vmem:[%s1849_s3 + $0x10] sm:$0xff] %v977_v16 }
 0x126   : > { %982 = vst [vmem:[%s1849_s3 + $0x18] sm:$0xff] %v978_v19 }
 0x127 PF: > { %s13_s16 = sadd.s32 1, %s1565_s16   ;;  %s1850_s12 = smov %s1553_s13 }
 0x128   : > { %p10_p12 = scmp.ge.s32.totalorder %s13_s16, 6   ;;  %s1851_s13 = smov %s1623_s20 }
 0x129   : > { %s1852_s14 = smov %s1561_s15  ;;  %s1853_s15 = smov %s1855_s17 }
 0x12a   :  { %12 = sbr.rel (!%p10_p12) target bundleno = 3 (0x3), region = 104 }

</bundles_post_ra>
